<compile_context>
chip_gen: v7x
topology: tpu7x:2x2x1
jax: 0.10.0
libtpu: 0.0.40
codegen_flags: <defaults>
</compile_context>

<pallas_src>
import functools

import jax
import jax.numpy as jnp
from jax import lax
from jax.experimental import pallas as pl
from jax.experimental.pallas import tpu as pltpu

BN_EPS = 1e-5
LEAKY_SLOPE = 0.01


def _round_up(x, m):
    return (x + m - 1) // m * m


def _pad2d(a, rows, cols):
    return jnp.pad(a, ((0, rows - a.shape[0]), (0, cols - a.shape[1])))


def _mlp_kernel(nr_hidden, compute_dtype, *refs):
    """One batch tile of the whole MLP.

    refs = (x_ref,
            w_1 ... w_L,           # BN-folded, transposed, padded weights
            hb_ref,                # stacked hidden biases (L, U_pad), f32
            w_out_ref, b_out_ref,  # final head
            o_ref)
    """
    x_ref = refs[0]
    w_refs = refs[1:1 + nr_hidden]
    hb_ref = refs[1 + nr_hidden]
    wout_ref = refs[2 + nr_hidden]
    bout_ref = refs[3 + nr_hidden]
    o_ref = refs[4 + nr_hidden]

    # x arrives in f32 (no wrapper cast pass); narrow once here for the MXU.
    h = x_ref[...].astype(compute_dtype)
    for l in range(nr_hidden):
        # Linear (+ folded BatchNorm): h @ W'_l with f32 accumulation on the MXU.
        z = jnp.dot(h, w_refs[l][...], preferred_element_type=jnp.float32)
        z = z + hb_ref[l:l + 1, :]                      # folded bias, f32
        z = jnp.where(z > 0, z, LEAKY_SLOPE * z)        # LeakyReLU in f32 (VPU)
        h = z.astype(compute_dtype)                     # narrow only the MXU input
        # TODO(synk): training-mode stochastic dropout omitted (identity at eval).

    out = jnp.dot(h, wout_ref[...], preferred_element_type=jnp.float32)
    out = out + bout_ref[...]
    o_ref[...] = out.astype(o_ref.dtype)


def _vmem_bytes_estimate(tb, f_pad, u_pad, c_pad, n_hidden, cbytes):
    x_tile = 2 * tb * f_pad * 4                               # double-buffered f32 input
    o_tile = 2 * tb * c_pad * 4                               # double-buffered f32 output
    w_res = (f_pad * u_pad + max(n_hidden - 1, 0) * u_pad * u_pad
             + u_pad * c_pad) * cbytes                        # single-buffered weights
    b_res = (n_hidden * u_pad + c_pad) * 4                    # single-buffered biases
    act = 4 * tb * u_pad * 4                                  # f32 intermediates
    return x_tile + o_tile + w_res + b_res + act


def _vmem_budgets():
    """Generation-aware (tb-selection budget, vmem_limit cap) in bytes."""
    try:
        cap = int(pltpu.get_tpu_info().vmem_capacity_bytes)
    except Exception:
        cap = 64 * 2**20                      # conservative: assume v7x-class VMEM
    if cap >= 96 * 2**20:                     # v5e / v6e: 128 MiB physical
        return 80 * 2**20, 100 * 2**20
    return 40 * 2**20, 52 * 2**20             # v7x: 64 MiB physical per TC


def nn_forward(x, params, *, nr_layers, nr_classes,
               compute_dtype=jnp.bfloat16, batch_tile=512):
    """Flattens input (x.view(-1, num_flat_features)), folds BN into the Linears,
    pads to lane-friendly shapes and runs one batch-tiled Pallas kernel."""
    assert nr_layers >= 1, "module always has fc1/bn1"
    x2d = x.reshape(x.shape[0], -1).astype(jnp.float32)
    batch, feat = x2d.shape
    nr_units = params["hidden"][0]["w"].shape[0]

    f_pad = _round_up(feat, 128)
    u_pad = _round_up(nr_units, 128)
    c_pad = _round_up(nr_classes, 128)
    cbytes = jnp.dtype(compute_dtype).itemsize
    sub = 16 if cbytes == 2 else (32 if cbytes == 1 else 8)   # dtype-aware sublane rows

    tb_budget, limit_cap = _vmem_budgets()

    # ---- batch tile selection ----
    tb = _round_up(min(batch_tile, _round_up(batch, sub)), sub)
    if tb >= 256:
        tb = _round_up(tb, 256)               # better 2x256x256 MXU fill (v6e/v7x)
    while tb > sub and _vmem_bytes_estimate(tb, f_pad, u_pad, c_pad,
                                            nr_layers, cbytes) > tb_budget:
        tb = max(sub, _round_up(tb // 2, sub))
    # Guarantee >=2 grid steps when possible so v7x's two TensorCores both work.
    while tb > sub and pl.cdiv(_round_up(batch, tb), tb) < 2:
        tb = max(sub, _round_up(tb // 2, sub))
    batch_pad = _round_up(batch, tb)
    grid = (pl.cdiv(batch_pad, tb),)

    est = _vmem_bytes_estimate(tb, f_pad, u_pad, c_pad, nr_layers, cbytes)
    vmem_limit = int(min(max(int(1.5 * est), 16 * 2**20), limit_cap))

    # ---- fold BatchNorm into Linear, transpose to (in, out), pad, cast ----
    w_list = []
    hb_rows = []
    in_pad = f_pad
    for layer in params["hidden"]:
        scale = layer["gamma"] * lax.rsqrt(layer["var"] + BN_EPS)      # (1, U)
        w_fold = layer["w"] * scale.reshape(-1, 1)                     # (U, in)
        b_fold = (layer["b"] - layer["mean"]) * scale + layer["beta"]  # (1, U)
        wt = _pad2d(w_fold.T, in_pad, u_pad).astype(compute_dtype)     # (in_pad, U_pad)
        w_list.append(wt)
        hb_rows.append(_pad2d(b_fold, 1, u_pad))
        in_pad = u_pad
    hidden_biases = jnp.concatenate(hb_rows, axis=0).astype(jnp.float32)  # (L, U_pad)

    w_out = _pad2d(params["out"]["w"].T, u_pad, c_pad).astype(compute_dtype)
    b_out = _pad2d(params["out"]["b"], 1, c_pad).astype(jnp.float32)

    # x stays in f32; the kernel casts right before the first dot.
    x_padded = _pad2d(x2d, batch_pad, f_pad)

    kernel = functools.partial(_mlp_kernel, nr_layers, compute_dtype)

    flops = 2 * batch_pad * (f_pad * u_pad
                             + max(nr_layers - 1, 0) * u_pad * u_pad
                             + u_pad * c_pad)
    bytes_accessed = (batch_pad * f_pad * 4 + batch_pad * c_pad * 4
                      + sum(int(w.size) for w in w_list) * cbytes
                      + int(w_out.size) * cbytes
                      + int(hidden_biases.size + b_out.size) * 4)
    cost = pl.CostEstimate(flops=flops, transcendentals=0,
                           bytes_accessed=bytes_accessed)

    def _build_and_call(single_buffer_weights):
        if single_buffer_weights:
            # Constant-index blocks never change across the grid -> 1 buffer.
            def const_spec(shape):
                return pl.BlockSpec(shape, lambda i: (0, 0),
                                    pipeline_mode=pl.Buffered(1))
        else:
            def const_spec(shape):
                return pl.BlockSpec(shape, lambda i: (0, 0))

        x_spec = pl.BlockSpec((tb, f_pad), lambda i: (i, 0))
        w_specs = [const_spec(w.shape) for w in w_list]
        hb_spec = const_spec(hidden_biases.shape)
        wout_spec = const_spec(w_out.shape)
        bout_spec = const_spec(b_out.shape)
        out_spec = pl.BlockSpec((tb, c_pad), lambda i: (i, 0))

        return pl.pallas_call(
            kernel,
            out_shape=jax.ShapeDtypeStruct((batch_pad, c_pad), jnp.float32),
            grid=grid,
            in_specs=[x_spec] + w_specs + [hb_spec, wout_spec, bout_spec],
            out_specs=out_spec,
            cost_estimate=cost,
            compiler_params=pltpu.CompilerParams(
                dimension_semantics=("parallel",),
                vmem_limit_bytes=vmem_limit,
            ),
        )(x_padded, *w_list, hidden_biases, w_out, b_out)

    try:
        out_padded = _build_and_call(True)
    except Exception:
        # Fallback: default double-buffering if Buffered(1) is rejected.
        out_padded = _build_and_call(False)

    return out_padded[:batch, :nr_classes]


def init_params(key, nr_initial_features, nr_units, nr_layers, nr_classes):
    """Deterministic parameter init mirroring the PyTorch module's shapes."""
    params = {"hidden": [], "out": {}}
    fan_in = nr_initial_features
    for _ in range(nr_layers):
        key, kw, kb, km, kv = jax.random.split(key, 5)
        bound = 1.0 / jnp.sqrt(fan_in)
        params["hidden"].append({
            "w": jax.random.uniform(kw, (nr_units, fan_in), jnp.float32, -bound, bound),
            "b": jax.random.uniform(kb, (1, nr_units), jnp.float32, -bound, bound),
            "gamma": jnp.ones((1, nr_units), jnp.float32),
            "beta": jnp.zeros((1, nr_units), jnp.float32),
            # synthetic (but deterministic) running statistics
            "mean": 0.1 * jax.random.normal(km, (1, nr_units), jnp.float32),
            "var": jax.random.uniform(kv, (1, nr_units), jnp.float32, 0.5, 1.5),
        })
        fan_in = nr_units
    key, kw, kb = jax.random.split(key, 3)
    bound = 1.0 / jnp.sqrt(fan_in)
    params["out"] = {
        "w": jax.random.uniform(kw, (nr_classes, fan_in), jnp.float32, -bound, bound),
        "b": jax.random.uniform(kb, (1, nr_classes), jnp.float32, -bound, bound),
    }
    return params


def reference_forward(x, params, *, nr_layers):
    """Plain-JAX f32 reference matching PyTorch eval-mode semantics."""
    h = x.reshape(x.shape[0], -1).astype(jnp.float32)
    for layer in params["hidden"]:
        z = h @ layer["w"].T + layer["b"]
        z = (z - layer["mean"]) * lax.rsqrt(layer["var"] + BN_EPS) * layer["gamma"] + layer["beta"]
        h = jnp.where(z > 0, z, LEAKY_SLOPE * z)
    return h @ params["out"]["w"].T + params["out"]["b"]


if __name__ == "__main__":
    # Small shapes consistent with the module's forward.
    nr_initial_features = 10
    nr_units = 32
    nr_layers = 3
    nr_classes = 1
    batch = 16

    key = jax.random.PRNGKey(0)
    key, kx = jax.random.split(key)
    x = jax.random.normal(kx, (batch, nr_initial_features), jnp.float32)

    params = init_params(key, nr_initial_features, nr_units, nr_layers, nr_classes)
    ref = reference_forward(x, params, nr_layers=nr_layers)

    # f32 compute path: tight check against the reference (batch_tile=8 -> 2 grid steps).
    out_f32 = nn_forward(x, params, nr_layers=nr_layers, nr_classes=nr_classes,
                         compute_dtype=jnp.float32, batch_tile=8)
    out_f32 = jax.block_until_ready(out_f32)
    assert out_f32.shape == (batch, nr_classes), out_f32.shape
    assert jnp.allclose(out_f32, ref, atol=1e-4, rtol=1e-4), (out_f32, ref)

    # bf16 MXU-input path (v6e/v7x recommendation): f32 accumulation, loose check.
    out_bf16 = nn_forward(x, params, nr_layers=nr_layers, nr_classes=nr_classes,
                          compute_dtype=jnp.bfloat16, batch_tile=16)
    out_bf16 = jax.block_until_ready(out_bf16)
    assert out_bf16.shape == (batch, nr_classes), out_bf16.shape
    assert jnp.allclose(out_bf16, ref, atol=5e-2, rtol=5e-2), (out_bf16, ref)

    print("KERNEL_OK")
</pallas_src>

<mosaic_0001>
module attributes {stable_mosaic.version = 11 : i64} {
  func.func @_mlp_kernel(%arg0: i32, %arg1: memref<8x128xf32, #tpu.memory_space<vmem>>, %arg2: memref<128x128xf32, #tpu.memory_space<vmem>>, %arg3: memref<128x128xf32, #tpu.memory_space<vmem>>, %arg4: memref<128x128xf32, #tpu.memory_space<vmem>>, %arg5: memref<3x128xf32, #tpu.memory_space<vmem>>, %arg6: memref<128x128xf32, #tpu.memory_space<vmem>>, %arg7: memref<1x128xf32, #tpu.memory_space<vmem>>, %arg8: memref<8x128xf32, #tpu.memory_space<vmem>>) attributes {dimension_semantics = [#tpu.dimension_semantics<parallel>], iteration_bounds = array<i64: 2>, scalar_prefetch = 0 : i64, scratch_operands = 0 : i64, tpu.core_type = #tpu.core_type<tc>, window_params = [{transform_indices = @transform_0, window_bounds = array<i64: 8, 128>}, {pipeline_mode = #tpu.pipeline_mode<synchronous>, transform_indices = @transform_1, window_bounds = array<i64: 128, 128>}, {pipeline_mode = #tpu.pipeline_mode<synchronous>, transform_indices = @transform_2, window_bounds = array<i64: 128, 128>}, {pipeline_mode = #tpu.pipeline_mode<synchronous>, transform_indices = @transform_3, window_bounds = array<i64: 128, 128>}, {pipeline_mode = #tpu.pipeline_mode<synchronous>, transform_indices = @transform_4, window_bounds = array<i64: 3, 128>}, {pipeline_mode = #tpu.pipeline_mode<synchronous>, transform_indices = @transform_5, window_bounds = array<i64: 128, 128>}, {pipeline_mode = #tpu.pipeline_mode<synchronous>, transform_indices = @transform_6, window_bounds = array<i64: 1, 128>}, {transform_indices = @transform_7, window_bounds = array<i64: 8, 128>}]} {
    %c0 = arith.constant 0 : index
    %c0_0 = arith.constant 0 : index
    %0 = vector.load %arg1[%c0, %c0_0] : memref<8x128xf32, #tpu.memory_space<vmem>>, vector<8x128xf32>
    %c0_1 = arith.constant 0 : index
    %c0_2 = arith.constant 0 : index
    %1 = vector.load %arg2[%c0_1, %c0_2] : memref<128x128xf32, #tpu.memory_space<vmem>>, vector<128x128xf32>
    %cst = arith.constant dense<0.000000e+00> : vector<8x128xf32>
    %2 = tpu.matmul %0, %1, %cst {dimension_numbers = #tpu.dot_dimension_numbers<[1], [0], [0], [1], [0, 0, 1, 1], [], []>} : vector<8x128xf32>, vector<128x128xf32>, vector<8x128xf32> -> vector<8x128xf32>
    %c0_3 = arith.constant 0 : index
    %c0_4 = arith.constant 0 : index
    %3 = vector.load %arg5[%c0_3, %c0_4] : memref<3x128xf32, #tpu.memory_space<vmem>>, vector<1x128xf32>
    %4 = vector.broadcast %3 : vector<1x128xf32> to vector<8x128xf32>
    %5 = arith.addf %2, %4 : vector<8x128xf32>
    %cst_5 = arith.constant 0.000000e+00 : f32
    %6 = vector.broadcast %cst_5 : f32 to vector<8x128xf32>
    %7 = arith.cmpf ogt, %5, %6 : vector<8x128xf32>
    %cst_6 = arith.constant 0.00999999977 : f32
    %8 = vector.broadcast %cst_6 : f32 to vector<8x128xf32>
    %9 = arith.mulf %8, %5 : vector<8x128xf32>
    %10 = arith.select %7, %5, %9 : vector<8x128xi1>, vector<8x128xf32>
    %c0_7 = arith.constant 0 : index
    %c0_8 = arith.constant 0 : index
    %11 = vector.load %arg3[%c0_7, %c0_8] : memref<128x128xf32, #tpu.memory_space<vmem>>, vector<128x128xf32>
    %cst_9 = arith.constant dense<0.000000e+00> : vector<8x128xf32>
    %12 = tpu.matmul %10, %11, %cst_9 {dimension_numbers = #tpu.dot_dimension_numbers<[1], [0], [0], [1], [0, 0, 1, 1], [], []>} : vector<8x128xf32>, vector<128x128xf32>, vector<8x128xf32> -> vector<8x128xf32>
    %c1 = arith.constant 1 : index
    %c0_10 = arith.constant 0 : index
    %13 = vector.load %arg5[%c1, %c0_10] : memref<3x128xf32, #tpu.memory_space<vmem>>, vector<1x128xf32>
    %14 = vector.broadcast %13 : vector<1x128xf32> to vector<8x128xf32>
    %15 = arith.addf %12, %14 : vector<8x128xf32>
    %cst_11 = arith.constant 0.000000e+00 : f32
    %16 = vector.broadcast %cst_11 : f32 to vector<8x128xf32>
    %17 = arith.cmpf ogt, %15, %16 : vector<8x128xf32>
    %cst_12 = arith.constant 0.00999999977 : f32
    %18 = vector.broadcast %cst_12 : f32 to vector<8x128xf32>
    %19 = arith.mulf %18, %15 : vector<8x128xf32>
    %20 = arith.select %17, %15, %19 : vector<8x128xi1>, vector<8x128xf32>
    %c0_13 = arith.constant 0 : index
    %c0_14 = arith.constant 0 : index
    %21 = vector.load %arg4[%c0_13, %c0_14] : memref<128x128xf32, #tpu.memory_space<vmem>>, vector<128x128xf32>
    %cst_15 = arith.constant dense<0.000000e+00> : vector<8x128xf32>
    %22 = tpu.matmul %20, %21, %cst_15 {dimension_numbers = #tpu.dot_dimension_numbers<[1], [0], [0], [1], [0, 0, 1, 1], [], []>} : vector<8x128xf32>, vector<128x128xf32>, vector<8x128xf32> -> vector<8x128xf32>
    %c2 = arith.constant 2 : index
    %c0_16 = arith.constant 0 : index
    %23 = vector.load %arg5[%c2, %c0_16] : memref<3x128xf32, #tpu.memory_space<vmem>>, vector<1x128xf32>
    %24 = vector.broadcast %23 : vector<1x128xf32> to vector<8x128xf32>
    %25 = arith.addf %22, %24 : vector<8x128xf32>
    %cst_17 = arith.constant 0.000000e+00 : f32
    %26 = vector.broadcast %cst_17 : f32 to vector<8x128xf32>
    %27 = arith.cmpf ogt, %25, %26 : vector<8x128xf32>
    %cst_18 = arith.constant 0.00999999977 : f32
    %28 = vector.broadcast %cst_18 : f32 to vector<8x128xf32>
    %29 = arith.mulf %28, %25 : vector<8x128xf32>
    %30 = arith.select %27, %25, %29 : vector<8x128xi1>, vector<8x128xf32>
    %c0_19 = arith.constant 0 : index
    %c0_20 = arith.constant 0 : index
    %31 = vector.load %arg6[%c0_19, %c0_20] : memref<128x128xf32, #tpu.memory_space<vmem>>, vector<128x128xf32>
    %cst_21 = arith.constant dense<0.000000e+00> : vector<8x128xf32>
    %32 = tpu.matmul %30, %31, %cst_21 {dimension_numbers = #tpu.dot_dimension_numbers<[1], [0], [0], [1], [0, 0, 1, 1], [], []>} : vector<8x128xf32>, vector<128x128xf32>, vector<8x128xf32> -> vector<8x128xf32>
    %c0_22 = arith.constant 0 : index
    %c0_23 = arith.constant 0 : index
    %33 = vector.load %arg7[%c0_22, %c0_23] : memref<1x128xf32, #tpu.memory_space<vmem>>, vector<1x128xf32>
    %34 = vector.broadcast %33 : vector<1x128xf32> to vector<8x128xf32>
    %35 = arith.addf %32, %34 : vector<8x128xf32>
    %c0_24 = arith.constant 0 : index
    %c0_25 = arith.constant 0 : index
    %36 = vector.load %arg8[%c0_24, %c0_25] : memref<8x128xf32, #tpu.memory_space<vmem>>, vector<8x128xf32>
    tpu.vector_store %arg8[%c0_24, %c0_25], %35 {strides = array<i32>} : memref<8x128xf32, #tpu.memory_space<vmem>>, vector<8x128xf32>,
    return
  }
  func.func @transform_0(%arg0: i32) -> (i32, i32) {
    %c0_i32 = arith.constant 0 : i32
    %c0_i32_0 = arith.constant 0 : i32
    return %arg0, %c0_i32 : i32, i32
  }
  func.func @transform_1(%arg0: i32) -> (i32, i32) {
    %c0_i32 = arith.constant 0 : i32
    %c0_i32_0 = arith.constant 0 : i32
    %c0_i32_1 = arith.constant 0 : i32
    return %c0_i32, %c0_i32_0 : i32, i32
  }
  func.func @transform_2(%arg0: i32) -> (i32, i32) {
    %c0_i32 = arith.constant 0 : i32
    %c0_i32_0 = arith.constant 0 : i32
    %c0_i32_1 = arith.constant 0 : i32
    return %c0_i32, %c0_i32_0 : i32, i32
  }
  func.func @transform_3(%arg0: i32) -> (i32, i32) {
    %c0_i32 = arith.constant 0 : i32
    %c0_i32_0 = arith.constant 0 : i32
    %c0_i32_1 = arith.constant 0 : i32
    return %c0_i32, %c0_i32_0 : i32, i32
  }
  func.func @transform_4(%arg0: i32) -> (i32, i32) {
    %c0_i32 = arith.constant 0 : i32
    %c0_i32_0 = arith.constant 0 : i32
    %c0_i32_1 = arith.constant 0 : i32
    return %c0_i32, %c0_i32_0 : i32, i32
  }
  func.func @transform_5(%arg0: i32) -> (i32, i32) {
    %c0_i32 = arith.constant 0 : i32
    %c0_i32_0 = arith.constant 0 : i32
    %c0_i32_1 = arith.constant 0 : i32
    return %c0_i32, %c0_i32_0 : i32, i32
  }
  func.func @transform_6(%arg0: i32) -> (i32, i32) {
    %c0_i32 = arith.constant 0 : i32
    %c0_i32_0 = arith.constant 0 : i32
    %c0_i32_1 = arith.constant 0 : i32
    return %c0_i32, %c0_i32_0 : i32, i32
  }
  func.func @transform_7(%arg0: i32) -> (i32, i32) {
    %c0_i32 = arith.constant 0 : i32
    %c0_i32_0 = arith.constant 0 : i32
    return %arg0, %c0_i32 : i32, i32
  }
}

module attributes {stable_mosaic.version = 11 : i64} {
  func.func @_mlp_kernel(%arg0: i32, %arg1: memref<8x128xf32, #tpu.memory_space<vmem>>, %arg2: memref<128x128xf32, #tpu.memory_space<vmem>>, %arg3: memref<128x128xf32, #tpu.memory_space<vmem>>, %arg4: memref<128x128xf32, #tpu.memory_space<vmem>>, %arg5: memref<3x128xf32, #tpu.memory_space<vmem>>, %arg6: memref<128x128xf32, #tpu.memory_space<vmem>>, %arg7: memref<1x128xf32, #tpu.memory_space<vmem>>, %arg8: memref<8x128xf32, #tpu.memory_space<vmem>>) attributes {dimension_semantics = [#tpu.dimension_semantics<parallel>], iteration_bounds = array<i64: 2>, scalar_prefetch = 0 : i64, scratch_operands = 0 : i64, tpu.core_type = #tpu.core_type<tc>, window_params = [{transform_indices = @transform_0, window_bounds = array<i64: 8, 128>}, {pipeline_mode = #tpu.pipeline_mode<synchronous>, transform_indices = @transform_1, window_bounds = array<i64: 128, 128>}, {pipeline_mode = #tpu.pipeline_mode<synchronous>, transform_indices = @transform_2, window_bounds = array<i64: 128, 128>}, {pipeline_mode = #tpu.pipeline_mode<synchronous>, transform_indices = @transform_3, window_bounds = array<i64: 128, 128>}, {pipeline_mode = #tpu.pipeline_mode<synchronous>, transform_indices = @transform_4, window_bounds = array<i64: 3, 128>}, {pipeline_mode = #tpu.pipeline_mode<synchronous>, transform_indices = @transform_5, window_bounds = array<i64: 128, 128>}, {pipeline_mode = #tpu.pipeline_mode<synchronous>, transform_indices = @transform_6, window_bounds = array<i64: 1, 128>}, {transform_indices = @transform_7, window_bounds = array<i64: 8, 128>}]} {
    %c0 = arith.constant 0 : index
    %c0_0 = arith.constant 0 : index
    %0 = vector.load %arg1[%c0, %c0_0] : memref<8x128xf32, #tpu.memory_space<vmem>>, vector<8x128xf32>
    %c0_1 = arith.constant 0 : index
    %c0_2 = arith.constant 0 : index
    %1 = vector.load %arg2[%c0_1, %c0_2] : memref<128x128xf32, #tpu.memory_space<vmem>>, vector<128x128xf32>
    %cst = arith.constant dense<0.000000e+00> : vector<8x128xf32>
    %2 = tpu.matmul %0, %1, %cst {dimension_numbers = #tpu.dot_dimension_numbers<[1], [0], [0], [1], [0, 0, 1, 1], [], []>} : vector<8x128xf32>, vector<128x128xf32>, vector<8x128xf32> -> vector<8x128xf32>
    %c0_3 = arith.constant 0 : index
    %c0_4 = arith.constant 0 : index
    %3 = vector.load %arg5[%c0_3, %c0_4] : memref<3x128xf32, #tpu.memory_space<vmem>>, vector<1x128xf32>
    %4 = vector.broadcast %3 : vector<1x128xf32> to vector<8x128xf32>
    %5 = arith.addf %2, %4 : vector<8x128xf32>
    %cst_5 = arith.constant 0.000000e+00 : f32
    %6 = vector.broadcast %cst_5 : f32 to vector<8x128xf32>
    %7 = arith.cmpf ogt, %5, %6 : vector<8x128xf32>
    %cst_6 = arith.constant 0.00999999977 : f32
    %8 = vector.broadcast %cst_6 : f32 to vector<8x128xf32>
    %9 = arith.mulf %8, %5 : vector<8x128xf32>
    %10 = arith.select %7, %5, %9 : vector<8x128xi1>, vector<8x128xf32>
    %c0_7 = arith.constant 0 : index
    %c0_8 = arith.constant 0 : index
    %11 = vector.load %arg3[%c0_7, %c0_8] : memref<128x128xf32, #tpu.memory_space<vmem>>, vector<128x128xf32>
    %cst_9 = arith.constant dense<0.000000e+00> : vector<8x128xf32>
    %12 = tpu.matmul %10, %11, %cst_9 {dimension_numbers = #tpu.dot_dimension_numbers<[1], [0], [0], [1], [0, 0, 1, 1], [], []>} : vector<8x128xf32>, vector<128x128xf32>, vector<8x128xf32> -> vector<8x128xf32>
    %c1 = arith.constant 1 : index
    %c0_10 = arith.constant 0 : index
    %13 = vector.load %arg5[%c1, %c0_10] : memref<3x128xf32, #tpu.memory_space<vmem>>, vector<1x128xf32>
    %14 = vector.broadcast %13 : vector<1x128xf32> to vector<8x128xf32>
    %15 = arith.addf %12, %14 : vector<8x128xf32>
    %cst_11 = arith.constant 0.000000e+00 : f32
    %16 = vector.broadcast %cst_11 : f32 to vector<8x128xf32>
    %17 = arith.cmpf ogt, %15, %16 : vector<8x128xf32>
    %cst_12 = arith.constant 0.00999999977 : f32
    %18 = vector.broadcast %cst_12 : f32 to vector<8x128xf32>
    %19 = arith.mulf %18, %15 : vector<8x128xf32>
    %20 = arith.select %17, %15, %19 : vector<8x128xi1>, vector<8x128xf32>
    %c0_13 = arith.constant 0 : index
    %c0_14 = arith.constant 0 : index
    %21 = vector.load %arg4[%c0_13, %c0_14] : memref<128x128xf32, #tpu.memory_space<vmem>>, vector<128x128xf32>
    %cst_15 = arith.constant dense<0.000000e+00> : vector<8x128xf32>
    %22 = tpu.matmul %20, %21, %cst_15 {dimension_numbers = #tpu.dot_dimension_numbers<[1], [0], [0], [1], [0, 0, 1, 1], [], []>} : vector<8x128xf32>, vector<128x128xf32>, vector<8x128xf32> -> vector<8x128xf32>
    %c2 = arith.constant 2 : index
    %c0_16 = arith.constant 0 : index
    %23 = vector.load %arg5[%c2, %c0_16] : memref<3x128xf32, #tpu.memory_space<vmem>>, vector<1x128xf32>
    %24 = vector.broadcast %23 : vector<1x128xf32> to vector<8x128xf32>
    %25 = arith.addf %22, %24 : vector<8x128xf32>
    %cst_17 = arith.constant 0.000000e+00 : f32
    %26 = vector.broadcast %cst_17 : f32 to vector<8x128xf32>
    %27 = arith.cmpf ogt, %25, %26 : vector<8x128xf32>
    %cst_18 = arith.constant 0.00999999977 : f32
    %28 = vector.broadcast %cst_18 : f32 to vector<8x128xf32>
    %29 = arith.mulf %28, %25 : vector<8x128xf32>
    %30 = arith.select %27, %25, %29 : vector<8x128xi1>, vector<8x128xf32>
    %c0_19 = arith.constant 0 : index
    %c0_20 = arith.constant 0 : index
    %31 = vector.load %arg6[%c0_19, %c0_20] : memref<128x128xf32, #tpu.memory_space<vmem>>, vector<128x128xf32>
    %cst_21 = arith.constant dense<0.000000e+00> : vector<8x128xf32>
    %32 = tpu.matmul %30, %31, %cst_21 {dimension_numbers = #tpu.dot_dimension_numbers<[1], [0], [0], [1], [0, 0, 1, 1], [], []>} : vector<8x128xf32>, vector<128x128xf32>, vector<8x128xf32> -> vector<8x128xf32>
    %c0_22 = arith.constant 0 : index
    %c0_23 = arith.constant 0 : index
    %33 = vector.load %arg7[%c0_22, %c0_23] : memref<1x128xf32, #tpu.memory_space<vmem>>, vector<1x128xf32>
    %34 = vector.broadcast %33 : vector<1x128xf32> to vector<8x128xf32>
    %35 = arith.addf %32, %34 : vector<8x128xf32>
    %c0_24 = arith.constant 0 : index
    %c0_25 = arith.constant 0 : index
    %36 = vector.load %arg8[%c0_24, %c0_25] : memref<8x128xf32, #tpu.memory_space<vmem>>, vector<8x128xf32>
    tpu.vector_store %arg8[%c0_24, %c0_25], %35 {strides = array<i32>} : memref<8x128xf32, #tpu.memory_space<vmem>>, vector<8x128xf32>,
    return
  }
  func.func @transform_0(%arg0: i32) -> (i32, i32) {
    %c0_i32 = arith.constant 0 : i32
    %c0_i32_0 = arith.constant 0 : i32
    return %arg0, %c0_i32 : i32, i32
  }
  func.func @transform_1(%arg0: i32) -> (i32, i32) {
    %c0_i32 = arith.constant 0 : i32
    %c0_i32_0 = arith.constant 0 : i32
    %c0_i32_1 = arith.constant 0 : i32
    return %c0_i32, %c0_i32_0 : i32, i32
  }
  func.func @transform_2(%arg0: i32) -> (i32, i32) {
    %c0_i32 = arith.constant 0 : i32
    %c0_i32_0 = arith.constant 0 : i32
    %c0_i32_1 = arith.constant 0 : i32
    return %c0_i32, %c0_i32_0 : i32, i32
  }
  func.func @transform_3(%arg0: i32) -> (i32, i32) {
    %c0_i32 = arith.constant 0 : i32
    %c0_i32_0 = arith.constant 0 : i32
    %c0_i32_1 = arith.constant 0 : i32
    return %c0_i32, %c0_i32_0 : i32, i32
  }
  func.func @transform_4(%arg0: i32) -> (i32, i32) {
    %c0_i32 = arith.constant 0 : i32
    %c0_i32_0 = arith.constant 0 : i32
    %c0_i32_1 = arith.constant 0 : i32
    return %c0_i32, %c0_i32_0 : i32, i32
  }
  func.func @transform_5(%arg0: i32) -> (i32, i32) {
    %c0_i32 = arith.constant 0 : i32
    %c0_i32_0 = arith.constant 0 : i32
    %c0_i32_1 = arith.constant 0 : i32
    return %c0_i32, %c0_i32_0 : i32, i32
  }
  func.func @transform_6(%arg0: i32) -> (i32, i32) {
    %c0_i32 = arith.constant 0 : i32
    %c0_i32_0 = arith.constant 0 : i32
    %c0_i32_1 = arith.constant 0 : i32
    return %c0_i32, %c0_i32_0 : i32, i32
  }
  func.func @transform_7(%arg0: i32) -> (i32, i32) {
    %c0_i32 = arith.constant 0 : i32
    %c0_i32_0 = arith.constant 0 : i32
    return %arg0, %c0_i32 : i32, i32
  }
}

</mosaic_0001>

<bundles_post_ra>
// kernel: tpu_custom_call.1
= control target key start
LH: loop header
LB: loop body
LE: loop exit
PB: predicated region body
PF: predicated region fallthrough
CT: control target
= control target key end

     0   :  { %12 = vsyncpa [#allocation3], 0  ;;  %s1891_s0 = inlined_call_operand.hbm [shape: f32[16,128], index: 0, kind: input, shape index: {}]   ;;  %s1892_s1 = inlined_call_operand.hbm [shape: f32[128,128], index: 1, kind: input, shape index: {}]   ;;  %s1893_s2 = inlined_call_operand.hbm [shape: f32[128,128], index: 2, kind: input, shape index: {}]   ;;  %s1894_s3 = inlined_call_operand.hbm [shape: f32[128,128], index: 3, kind: input, shape index: {}]   ;;  %s1895_s4 = inlined_call_operand.vmem [shape: f32[3,128], index: 4, kind: input, shape index: {}]   ;;  %s1896_s5 = inlined_call_operand.hbm [shape: f32[128,128], index: 5, kind: input, shape index: {}]   ;;  %s1897_s6 = inlined_call_operand.vmem [shape: f32[1,128], index: 6, kind: input, shape index: {}]   ;;  %s1898_s7 = inlined_call_operand.hbm [shape: f32[16,128], index: 7, kind: output, shape index: {}]  }
   0x1   :  { %14 = vsyncpa [#allocation3 + $0x1], 0 }
   0x2   :  { %15 = vsyncpa [#allocation6], 0 }
   0x3   :  { %16 = vsyncpa [#allocation9], 0 }
   0x4   :  { %17 = vsyncpa [#allocation4], 0 }
   0x5   :  { %19 = vsyncpa [#allocation4 + $0x1], 0  ;;  %s1540_s24 = smov 0   ;;  %s1542_s25 = smov 0  }
   0x6   :  { %s1544_s26 = smov 0   ;;  %s1546_s27 = smov 0  }
   0x7 LB: > { %s1489_s28 = smov [#allocation5]   ;;  %s1561_s30 = sadd.s32 4294967295, %s1487_s27   ;;  %s1487_s27 = sphi %s1546_s27, %s1922_s27   ;;  %s1483_s26 = sphi %s1544_s26, %s1921_s26   ;;  %s1479_s25 = sphi %s1542_s25, %s1920_s25   ;;  %s1475_s24 = sphi %s1540_s24, %s1919_s24  }
   0x8   : > { %s220_s29 = sshll.u32 %s1489_s28, 4  ;;  %p852_p0 = scmp.ge.s32.totalorder %s1487_s27, 1  ;;  %s1566_s29 = int_to_ptr.vmem [resolvable:$true] %s220_s29 }
   0x9   : > { %p1899_p1 = scmp.eq.s32.totalorder %s1561_s30, 0  ;;  %p208_p2 = scmp.lt.s32.totalorder %s1487_s27, 3 }
   0xa   : > { %s1490_s9 = smov [#allocation8]   ;;  %s1491_s12 = smov [#allocation7]  }
   0xb   : > { %p1568_p3 = pnand %p852_p0, %p208_p2  ;;  %s246_s10 = sshll.u32 %s1490_s9, 4  ;;  %s1581_s10 = int_to_ptr.vmem [resolvable:$true] %s246_s10 }
   0xc   : > { %s233_s13 = sshll.u32 %s1491_s12, 4  ;;  %s1271_s16 = scalar_lea.hbm %s1892_s1, 2048  ;;  %s1583_s13 = int_to_ptr.vmem [resolvable:$true] %s233_s13 }
   0xd   : > { %s1902_s8 = scalar_select %p1568_p3, 1, 0 }
   0xe   : > { %p1199_p5 = pneg %p1568_p3  ;;  %p1272_p7 = scmp.ne.s32.totalorder %s1892_s1, %s1271_s16 }
   0xf   : > { %p1278_p11 = scmp.lt.u32.totalorder %s1271_s16, %s1892_s1 }
  0x10   : > { %p1577_p6 = pnand %p1199_p5, %p1899_p1 }
  0x12   : > { %p1593_p8 = pneg %p1577_p6 }
  0x14   : > { %p1274_p9 = pnand %p1593_p8, %p1272_p7 }
  0x16   : > { %p1275_p10 = pneg %p1274_p9 }
  0x18   : > { %p1280_p12 = pnand %p1278_p11, %p1275_p10 }
  0x1a   : > { %1283 = shalt.err (!%p1280_p12)
}
  0x1b   : > { %s1284_s22 = scalar_lea.vmem %s1566_s29, 2048  ;;  %p1292_p5 = scmp.lt.s32.totalorder %s1566_s29, %s1566_s29 }
  0x1c   : > { %p1285_p13 = scmp.ne.s32.totalorder %s1566_s29, %s1284_s22  ;;  %p1293_p4 = scmp.lt.s32.totalorder %s1284_s22, %s1284_s22 }
  0x1e   : > { %p1287_p0 = pnand %p1285_p13, %p1593_p8  ;;  %p1294_p7 = por %p1293_p4, %p1292_p5 }
  0x20   : > { %p1288_p2 = pneg %p1287_p0 }
  0x22   : > { %p1295_p9 = pnand %p1294_p7, %p1288_p2 }
  0x24   : > { %1298 = shalt.err (!%p1295_p9)
}
  0x25   : > { %s1492_s23 = smov 128   ;;  %s1493_s28 = smov 8  }
  0x26   : > { %1202 = dma.hbm_to_vmem [thread:$0]  (!%p1577_p6), %s1892_s1, 2048, %s1566_s29, [#allocation6], %s1492_s23, %s1492_s23, %s1493_s28  }
  0x27   : > { %s1299_s16 = scalar_lea.hbm %s1894_s3, 2048 }
  0x28   : > { %p1300_p4 = scmp.ne.s32.totalorder %s1894_s3, %s1299_s16  ;;  %p1306_p12 = scmp.lt.u32.totalorder %s1299_s16, %s1894_s3 }
  0x2a   : > { %p1302_p10 = pnand %p1300_p4, %p1593_p8 }
  0x2c   : > { %p1303_p11 = pneg %p1302_p10 }
  0x2e   : > { %p1308_p13 = pnand %p1306_p12, %p1303_p11 }
  0x30   : > { %1311 = shalt.err (!%p1308_p13)
}
  0x31   : > { %s1312_s29 = scalar_lea.vmem %s1581_s10, 2048  ;;  %p1320_p7 = scmp.lt.s32.totalorder %s1581_s10, %s1581_s10 }
  0x32   : > { %p1313_p0 = scmp.ne.s32.totalorder %s1581_s10, %s1312_s29  ;;  %p1321_p9 = scmp.lt.s32.totalorder %s1312_s29, %s1312_s29 }
  0x34   : > { %p1315_p2 = pnand %p1313_p0, %p1593_p8  ;;  %p1322_p4 = por %p1321_p9, %p1320_p7 }
  0x36   : > { %p1316_p5 = pneg %p1315_p2 }
  0x38   : > { %p1323_p10 = pnand %p1322_p4, %p1316_p5 }
  0x3a   : > { %1326 = shalt.err (!%p1323_p10)
}
  0x3b   : > { %1208 = dma.hbm_to_vmem [thread:$0]  (!%p1577_p6), %s1894_s3, 2048, %s1581_s10, [#allocation9], %s1492_s23, %s1492_s23, %s1493_s28  }
  0x3c   : > { %s1327_s15 = scalar_lea.hbm %s1893_s2, 2048 }
  0x3d   : > { %p1328_p11 = scmp.ne.s32.totalorder %s1893_s2, %s1327_s15  ;;  %p1334_p0 = scmp.lt.u32.totalorder %s1327_s15, %s1893_s2 }
  0x3f   : > { %p1330_p12 = pnand %p1328_p11, %p1593_p8 }
  0x41   : > { %p1331_p13 = pneg %p1330_p12 }
  0x43   : > { %p1336_p2 = pnand %p1334_p0, %p1331_p13 }
  0x45   : > { %1339 = shalt.err (!%p1336_p2)
}
  0x46   : > { %s1340_s10 = scalar_lea.vmem %s1583_s13, 2048  ;;  %p1348_p4 = scmp.lt.s32.totalorder %s1583_s13, %s1583_s13 }
  0x47   : > { %p1341_p5 = scmp.ne.s32.totalorder %s1583_s13, %s1340_s10  ;;  %p1349_p10 = scmp.lt.s32.totalorder %s1340_s10, %s1340_s10 }
  0x49   : > { %p1343_p7 = pnand %p1341_p5, %p1593_p8  ;;  %p1350_p11 = por %p1349_p10, %p1348_p4 }
  0x4b   : > { %p1344_p9 = pneg %p1343_p7 }
  0x4d   : > { %p1351_p12 = pnand %p1350_p11, %p1344_p9 }
  0x4f   : > { %1354 = shalt.err (!%p1351_p12)
}
  0x50   : > { %1205 = dma.hbm_to_vmem [thread:$0]  (!%p1577_p6), %s1893_s2, 2048, %s1583_s13, [#allocation6], %s1492_s23, %s1492_s23, %s1493_s28  }
  0x51   : > { %s1494_s22 = smov [#allocation10]   ;;  %s1355_s15 = scalar_lea.hbm %s1896_s5, 2048 }
  0x52   : > { %s262_s9 = sshll.u32 %s1494_s22, 4  ;;  %p1356_p13 = scmp.ne.s32.totalorder %s1896_s5, %s1355_s15  ;;  %s263_s9 = int_to_ptr.vmem [resolvable:$true] %s262_s9 }
  0x53   : > { %p1362_p5 = scmp.lt.u32.totalorder %s1355_s15, %s1896_s5 }
  0x54   : > { %p1358_p0 = pnand %p1356_p13, %p1593_p8 }
  0x56   : > { %p1359_p2 = pneg %p1358_p0 }
  0x58   : > { %p1364_p7 = pnand %p1362_p5, %p1359_p2 }
  0x5a   : > { %1367 = shalt.err (!%p1364_p7)
}
  0x5b   : > { %s1368_s13 = scalar_lea.vmem %s263_s9, 2048  ;;  %p1376_p11 = scmp.lt.s32.totalorder %s263_s9, %s263_s9 }
  0x5c   : > { %p1369_p9 = scmp.ne.s32.totalorder %s263_s9, %s1368_s13  ;;  %p1377_p12 = scmp.lt.s32.totalorder %s1368_s13, %s1368_s13 }
  0x5e   : > { %p1371_p4 = pnand %p1369_p9, %p1593_p8  ;;  %p1378_p1 = por %p1377_p12, %p1376_p11 }
  0x60   : > { %p1372_p10 = pneg %p1371_p4 }
  0x62   : > { %p1379_p3 = pnand %p1378_p1, %p1372_p10 }
  0x64   : > { %1382 = shalt.err (!%p1379_p3)
}
  0x65   : > { %1211 = dma.hbm_to_vmem [thread:$0]  (!%p1577_p6), %s1896_s5, 2048, %s263_s9, [#allocation9], %s1492_s23, %s1492_s23, %s1493_s28  }
  0x66   : > { %s851_s11 = sadd.s32 4294967294, %s1487_s27   ;;  %s1692_s19 = sadd.s32 1, %s1487_s27  }
  0x67   : > { %s29_s29 = ssub.s32 %s1487_s27, %s1692_s19  ;;  %s32_s22 = sadd.s32 1, %s1483_s26 }
  0x68   : > { %p30_p1 = scmp.eq.s32.totalorder %s29_s29, 0  ;;  %p39_p3 = scmp.ne.s32.totalorder %s1483_s26, %s1479_s25 }
  0x69   : > { %p40_p8 = scmp.eq.s32.totalorder %s1487_s27, 0  ;;  %p45_p13 = scmp.ne.s32.totalorder %s1479_s25, %s1475_s24 }
  0x6a   : > { %s1703_s12 = scalar_select %p30_p1, %s1483_s26, %s32_s22  }
  0x6b   : > { %p1705_p0 = por %p40_p8, %p39_p3  ;;  %p1906_p2 = scmp.eq.s32.totalorder %s1561_s30, 0 }
  0x6c   : > { %p195_p5 = scmp.eq.s32.totalorder %s1561_s30, 1  ;;  %p201_p7 = scmp.eq.s32.totalorder %s851_s11, 1 }
  0x6d   : > { %p1711_p6 = por %p1906_p2, %p45_p13  ;;  %p1224_p9 = scmp.lt.s32.totalorder %s1487_s27, 2 }
  0x6e   : > { %s279_s28 = sand.u32 1, %s1483_s26   ;;  %p1718_p4 = por %p195_p5, %p39_p3 }
  0x6f   : > { %p1722_p10 = por %p201_p7, %p45_p13  ;;  %s858_s16 = sshll.u32 %s279_s28, 3 }
  0x70   : > { %s1908_s9 = scalar_select %p1718_p4, 1, 0 }
  0x71   : > { %s1909_s15 = scalar_select %p1722_p10, 1, 0 }
  0x72   : > { %s859_s17 = sshll.u32 %s1487_s27, 7  ;;  %s283_s10 = scalar_lea.vmem [#allocation2], %s858_s16 }
  0x73   : > { %s1730_s13 = scalar_lea.hbm %s1891_s0, %s859_s17  ;;  %s290_s21 = sshll.u32 %s283_s10, 4  ;;  %s1732_s21 = int_to_ptr.vmem [resolvable:$true] %s290_s21 }
  0x74   : > { %p1736_p11 = pnand %p1224_p9, %p1705_p0  ;;  %s280_s29 = scalar_lea.sflag [#allocation3], %s279_s28 }
  0x75   : > { %s1383_s22 = scalar_lea.hbm %s1730_s13, 128  ;;  %s1388_s18 = scalar_lea.hbm %s1891_s0, 256 }
  0x76   : > { %p1384_p12 = scmp.ne.s32.totalorder %s1730_s13, %s1383_s22  ;;  %p1385_p1 = pneg %p1736_p11 }
  0x77   : > { %p1389_p13 = scmp.lt.u32.totalorder %s1730_s13, %s1891_s0  ;;  %p1390_p0 = scmp.lt.u32.totalorder %s1388_s18, %s1383_s22 }
  0x78   : > { %p1386_p3 = pnand %p1385_p1, %p1384_p12  ;;  %p1392_p5 = scmp.lt.u32.totalorder %s1383_s22, %s1730_s13 }
  0x79   : > { %p1391_p2 = por %p1390_p0, %p1389_p13 }
  0x7a   : > { %p1387_p8 = pneg %p1386_p3 }
  0x7b   : > { %p1393_p7 = por %p1392_p5, %p1391_p2 }
  0x7d   : > { %p1394_p9 = pnand %p1393_p7, %p1387_p8 }
  0x7f   : > { %1397 = shalt.err (!%p1394_p9)
}
  0x80   : > { %s1398_s28 = scalar_lea.vmem %s1732_s21, 128  ;;  %s1495_s10 = smov [#allocation2]  }
  0x81   : > { %p1399_p12 = scmp.ne.s32.totalorder %s1732_s21, %s1398_s28  ;;  %s1403_s16 = sshll.u32 %s1495_s10, 4  ;;  %s1404_s16 = int_to_ptr.vmem [resolvable:$false] %s1403_s16 }
  0x82   : > { %s1405_s17 = scalar_lea.vmem %s1404_s16, 256  ;;  %p1406_p4 = scmp.lt.s32.totalorder %s1732_s21, %s1404_s16 }
  0x83   : > { %p1401_p3 = pnand %p1399_p12, %p1385_p1  ;;  %p1407_p13 = scmp.lt.s32.totalorder %s1405_s17, %s1398_s28 }
  0x85   : > { %p1402_p10 = pneg %p1401_p3  ;;  %p1408_p0 = por %p1407_p13, %p1406_p4 }
  0x87   : > { %p1409_p2 = pnand %p1408_p0, %p1402_p10 }
  0x89   : > { %1412 = shalt.err (!%p1409_p2)
}
  0x8a   : > { %1215 = dma.hbm_to_vmem [thread:$0]  (!%p1736_p11), %s1730_s13, 128, %s1732_s21, %s280_s29  }
  0x8b   : > { %p1911_p8 = scmp.ne.s32.totalorder %s1902_s8, 0 }
  0x8c   : > { %s1768_s22 = sand.u32 (!%p1911_p8), 1, %s1479_s25  }
  0x8d   : > { %299 = sbr.rel (%p1911_p8) target bundleno = 1068 (0x42c), region = 48  ;;  %s861_s18 = sshll.u32 (!%p1911_p8), %s1768_s22, 3 }
  0x8e   : > { %s302_s14 = scalar_lea.sflag (!%p1911_p8), [#allocation3], %s1768_s22  ;;  %s1774_s20 = scalar_lea.vmem (!%p1911_p8), [#allocation2], %s861_s18 }
  0x94   : > { %1458 = dma.done.wait (%p1711_p6), %s302_s14, 128  }
  0x95   : > { %1460 = vsyncadd (%p1711_p6), %s302_s14, 4294967168  ;;  %p1912_p4 = scmp.eq.s32.totalorder %s1561_s30, 0 }
  0x97   : > { %1462 = dma.done.wait (%p1912_p4), [#allocation6], 4096   ;;  %p1913_p10 = pmov %p1912_p4 }
  0x98   : > { %p1914_p11 = pmov %p1912_p4 }
  0x99   : > { %1464 = vsyncadd (%p1913_p10), [#allocation6], 4294963200 }
  0x9a   : > { %1466 = dma.done.wait (%p1914_p11), [#allocation9], 4096   ;;  %p1915_p1 = pmov %p1912_p4 }
  0x9b   : > { %v1496_v0 = vmov 0.0|0.0   ;;  %vm1497_vm0 = vmmov 0   ;;  %v1498_v1 = vmov 0.0   ;;  %v353_v2 = vld [vmem:[#allocation5] sm:$0xff]  ;;  %v354_v3 = vld [vmem:[#allocation5 + $0x8] sm:$0xff]  ;;  %v355_v4 = vld [vmem:[#allocation5 + $0x10] sm:$0xff] }
  0x9c   : > { %1468 = vsyncadd (%p1915_p1), [#allocation9], 4294963200  ;;  %1083 = vmatprep.subr.bf16.mxu0 %v1496_v0  ;;  %975 = vmatprep.mubr.msk.f32.mxu0 %vm1497_vm0, %v1498_v1  ;;  %v1084_v5 = vpack.c.bf16 %v354_v3, %v353_v2  ;;  %v356_v6 = vld [vmem:[#allocation5 + $0x18] sm:$0xff]  ;;  %v357_v8 = vld [vmem:[#allocation5 + $0x20] sm:$0xff]  ;;  %s872_s16 = sshll.u32 %s1561_s30, 7  ;;  %s351_s17 = scalar_lea.vmem [#allocation11], %s861_s18 }
  0x9d   : > { %1107 = vmatprep.subr.bf16.mxu1 %v1496_v0  ;;  %1010 = vmatprep.mubr.msk.f32.mxu1 %vm1497_vm0, %v1498_v1  ;;  %v1087_v7 = vpack.c.bf16 %v356_v6, %v355_v4  ;;  %v358_v9 = vld [vmem:[#allocation5 + $0x28] sm:$0xff]  ;;  %v447_v10 = vld [vmem:[#allocation7] sm:$0xff]  ;;  %v449_v12 = vld [vmem:[#allocation7 + $0x10] sm:$0xff]  ;;  %s743_s14 = sshll.u32 %s351_s17, 4  ;;  %s1847_s23 = scalar_lea.hbm %s1898_s7, %s872_s16  ;;  %s1849_s14 = int_to_ptr.vmem [resolvable:$true] %s743_s14 }
  0x9e   : > { %1085 = vmatpush3.bf16.msra.mxu0 %v1084_v5  ;;  %v448_v11 = vld [vmem:[#allocation7 + $0x8] sm:$0xff]  ;;  %v450_v13 = vld [vmem:[#allocation7 + $0x18] sm:$0xff]  ;;  %v1090_v14 = vpack.c.bf16 %v358_v9, %v357_v8  ;;  %v359_v16 = vld [vmem:[#allocation5 + $0x30] sm:$0xff]  ;;  %s730_s13 = scalar_lea.sflag [#allocation4], %s1768_s22  ;;  %s1413_s21 = scalar_lea.vmem %s1849_s14, 128 }
  0x9f   : > { %1086 = vmatprep.subr.bf16.mxu0 %v1496_v0  ;;  %v1108_v15 = vpack.c.bf16 %v448_v11, %v447_v10  ;;  %v360_v17 = vld [vmem:[#allocation5 + $0x38] sm:$0xff]  ;;  %v1111_v18 = vpack.c.bf16 %v450_v13, %v449_v12  ;;  %v451_v19 = vld [vmem:[#allocation7 + $0x20] sm:$0xff]  ;;  %v452_v20 = vld [vmem:[#allocation7 + $0x28] sm:$0xff]  ;;  %p1414_p6 = scmp.ne.s32.totalorder %s1849_s14, %s1413_s21  ;;  %p1916_p5 = scmp.ne.s32.totalorder %s1908_s9, 0 }
  0xa0   : > { %v1093_v21 = vpack.c.bf16 %v360_v17, %v359_v16  ;;  %v361_v22 = vld [vmem:[#allocation5 + $0x40] sm:$0xff]  ;;  %v362_v23 = vld [vmem:[#allocation5 + $0x48] sm:$0xff]  ;;  %v1114_v24 = vpack.c.bf16 %v452_v20, %v451_v19  ;;  %v453_v25 = vld [vmem:[#allocation7 + $0x30] sm:$0xff]  ;;  %s1499_s30 = smov [#allocation11]  }
  0xa1   : > { %1109 = vmatpush3.bf16.msra.mxu1 %v1108_v15  ;;  %v454_v26 = vld [vmem:[#allocation7 + $0x38] sm:$0xff]  ;;  %v1096_v27 = vpack.c.bf16 %v362_v23, %v361_v22  ;;  %v363_v28 = vld [vmem:[#allocation5 + $0x50] sm:$0xff]  ;;  %v455_v31 = vld [vmem:[#allocation7 + $0x40] sm:$0xff]  ;;  %p1415_p7 = pnand %p1414_p6, %p1916_p5  ;;  %s1417_s18 = sshll.u32 %s1499_s30, 4  ;;  %s1418_s18 = int_to_ptr.vmem [resolvable:$false] %s1417_s18 }
  0xa2   : > { %1088 = vmatpush3.bf16.msra.mxu0 %v1087_v7  ;;  %1110 = vmatprep.subr.bf16.mxu1 %v1496_v0  ;;  %v364_v29 = vld [vmem:[#allocation5 + $0x58] sm:$0xff]  ;;  %v1117_v30 = vpack.c.bf16 %v454_v26, %v453_v25  ;;  %v456_v32 = vld [vmem:[#allocation7 + $0x48] sm:$0xff]  ;;  %v365_v34 = vld [vmem:[#allocation5 + $0x60] sm:$0xff]  ;;  %s1419_s11 = scalar_lea.vmem %s1418_s18, 256  ;;  %p1420_p12 = scmp.lt.s32.totalorder %s1849_s14, %s1418_s18 }
  0xa3   : > { %1089 = vmatprep.subr.bf16.mxu0 %v1496_v0  ;;  %v1099_v33 = vpack.c.bf16 %v364_v29, %v363_v28  ;;  %v366_v35 = vld [vmem:[#allocation5 + $0x68] sm:$0xff]  ;;  %v1120_v36 = vpack.c.bf16 %v456_v32, %v455_v31  ;;  %v457_v37 = vld [vmem:[#allocation7 + $0x50] sm:$0xff]  ;;  %v458_v38 = vld [vmem:[#allocation7 + $0x58] sm:$0xff]  ;;  %p1416_p9 = pneg %p1415_p7  ;;  %p1421_p3 = scmp.lt.s32.totalorder %s1419_s11, %s1413_s21 }
  0xa4   : > { %v1102_v39 = vpack.c.bf16 %v366_v35, %v365_v34  ;;  %v367_v40 = vld [vmem:[#allocation5 + $0x70] sm:$0xff]  ;;  %v368_v41 = vld [vmem:[#allocation5 + $0x78] sm:$0xff]  ;;  %v1123_v42 = vpack.c.bf16 %v458_v38, %v457_v37  ;;  %v459_v43 = vld [vmem:[#allocation7 + $0x60] sm:$0xff] }
  0xa5   : > { %1112 = vmatpush3.bf16.msra.mxu1 %v1111_v18  ;;  %v460_v44 = vld [vmem:[#allocation7 + $0x68] sm:$0xff]  ;;  %v1105_v45 = vpack.c.bf16 %v368_v41, %v367_v40  ;;  %v352_v47 = vld [vmem:[%s1774_s20] sm:$0xff]  ;;  %v541_v51 = vld [vmem:[#allocation8] sm:$0xff]  ;;  %p1422_p13 = por %p1421_p3, %p1420_p12 }
  0xa6   : > { %1091 = vmatpush3.bf16.msra.mxu0 %v1090_v14  ;;  %1113 = vmatprep.subr.bf16.mxu1 %v1496_v0  ;;  %v1126_v46 = vpack.c.bf16 %v460_v44, %v459_v43  ;;  %v461_v48 = vld [vmem:[#allocation7 + $0x70] sm:$0xff]  ;;  %v462_v49 = vld [vmem:[#allocation7 + $0x78] sm:$0xff]  ;;  %v542_v52 = vld [vmem:[#allocation8 + $0x8] sm:$0xff] }
  0xa7   : > { %1092 = vmatprep.subr.bf16.mxu0 %v1496_v0  ;;  %v1129_v50 = vpack.c.bf16 %v462_v49, %v461_v48  ;;  %v543_v53 = vld [vmem:[#allocation8 + $0x10] sm:$0xff]  ;;  %v1132_v54 = vpack.c.bf16 %v542_v52, %v541_v51  ;;  %v544_v55 = vld [vmem:[#allocation8 + $0x18] sm:$0xff]  ;;  %v545_v57 = vld [vmem:[#allocation8 + $0x20] sm:$0xff]  ;;  %p1423_p0 = pnand %p1422_p13, %p1416_p9 }
  0xa8   : > { %v1135_v56 = vpack.c.bf16 %v544_v55, %v543_v53  ;;  %v546_v58 = vld [vmem:[#allocation8 + $0x28] sm:$0xff]  ;;  %v547_v60 = vld [vmem:[#allocation8 + $0x30] sm:$0xff]  ;;  %v548_v61 = vld [vmem:[#allocation8 + $0x38] sm:$0xff] }
  0xa9   : > { %1115 = vmatpush3.bf16.msra.mxu1 %v1114_v24  ;;  %v1138_v59 = vpack.c.bf16 %v546_v58, %v545_v57  ;;  %v1141_v62 = vpack.c.bf16 %v548_v61, %v547_v60  ;;  %v549_v63 = vld [vmem:[#allocation8 + $0x40] sm:$0xff]  ;;  %v550_v2 = vld [vmem:[#allocation8 + $0x48] sm:$0xff]  ;;  %v551_v4 = vld [vmem:[#allocation8 + $0x50] sm:$0xff] }
  0xaa   : > { %1094 = vmatpush3.bf16.msra.mxu0 %v1093_v21  ;;  %1116 = vmatprep.subr.bf16.mxu1 %v1496_v0  ;;  %v1144_v3 = vpack.c.bf16 %v550_v2, %v549_v63  ;;  %v552_v5 = vld [vmem:[#allocation8 + $0x58] sm:$0xff]  ;;  %v553_v7 = vld [vmem:[#allocation8 + $0x60] sm:$0xff]  ;;  %v554_v8 = vld [vmem:[#allocation8 + $0x68] sm:$0xff] }
  0xab   : > { %1095 = vmatprep.subr.bf16.mxu0 %v1496_v0  ;;  %v1147_v6 = vpack.c.bf16 %v552_v5, %v551_v4  ;;  %v1150_v9 = vpack.c.bf16 %v554_v8, %v553_v7  ;;  %v867_v10 = vld [vmem:[%s1895_s4] ss:$0 sm:$0xff]  ;;  %v556_v17 = vld [vmem:[#allocation8 + $0x78] sm:$0xff]  ;;  %v635_v19 = vld [vmem:[#allocation10] sm:$0xff] }
  0xac   : > { %v555_v16 = vld [vmem:[#allocation8 + $0x70] sm:$0xff]  ;;  %v636_v20 = vld [vmem:[#allocation10 + $0x8] sm:$0xff]  ;;  %v638_v23 = vld [vmem:[#allocation10 + $0x18] sm:$0xff] }
  0xad   : > { %1118 = vmatpush3.bf16.msra.mxu1 %v1117_v30  ;;  %v1153_v18 = vpack.c.bf16 %v556_v17, %v555_v16  ;;  %v637_v21 = vld [vmem:[#allocation10 + $0x10] sm:$0xff]  ;;  %v1156_v22 = vpack.c.bf16 %v636_v20, %v635_v19  ;;  %v639_v25 = vld [vmem:[#allocation10 + $0x20] sm:$0xff]  ;;  %v640_v26 = vld [vmem:[#allocation10 + $0x28] sm:$0xff] }
  0xae   : > { %1097 = vmatpush3.bf16.msra.mxu0 %v1096_v27  ;;  %1119 = vmatprep.subr.bf16.mxu1 %v1496_v0  ;;  %v1159_v24 = vpack.c.bf16 %v638_v23, %v637_v21  ;;  %v1162_v27 = vpack.c.bf16 %v640_v26, %v639_v25  ;;  %v642_v28 = vld [vmem:[#allocation10 + $0x38] sm:$0xff]  ;;  %v643_v30 = vld [vmem:[#allocation10 + $0x40] sm:$0xff]  ;;  %v644_v31 = vld [vmem:[#allocation10 + $0x48] sm:$0xff] }
  0xaf   : > { %1098 = vmatprep.subr.bf16.mxu0 %v1496_v0  ;;  %v1168_v32 = vpack.c.bf16 %v644_v31, %v643_v30  ;;  %v646_v34 = vld [vmem:[#allocation10 + $0x58] sm:$0xff]  ;;  %v648_v37 = vld [vmem:[#allocation10 + $0x68] sm:$0xff]  ;;  %v870_v53 = vld [vmem:[%s1897_s6] ss:$0 sm:$0xff] }
  0xb1   : > { %1121 = vmatpush3.bf16.msra.mxu1 %v1120_v36  ;;  %v647_v36 = vld [vmem:[#allocation10 + $0x60] sm:$0xff] }
  0xb2   : > { %1100 = vmatpush3.bf16.msra.mxu0 %v1099_v33  ;;  %1122 = vmatprep.subr.bf16.mxu1 %v1496_v0  ;;  %v645_v33 = vld [vmem:[#allocation10 + $0x50] sm:$0xff]  ;;  %v1174_v38 = vpack.c.bf16 %v648_v37, %v647_v36 }
  0xb3   : > { %1101 = vmatprep.subr.bf16.mxu0 %v1496_v0  ;;  %v1171_v35 = vpack.c.bf16 %v646_v34, %v645_v33 }
  0xb5   : > { %1124 = vmatpush3.bf16.msra.mxu1 %v1123_v42 }
  0xb6   : > { %1103 = vmatpush3.bf16.msra.mxu0 %v1102_v39  ;;  %1125 = vmatprep.subr.bf16.mxu1 %v1496_v0  ;;  %v868_v39 = vld [vmem:[%s1895_s4 + $0x1] ss:$0 sm:$0xff] }
  0xb7   : > { %1104 = vmatprep.subr.bf16.mxu0 %v1496_v0 }
  0xb9   : > { %1127 = vmatpush3.bf16.msra.mxu1 %v1126_v46  ;;  %v650_v46 = vld [vmem:[#allocation10 + $0x78] sm:$0xff] }
  0xba   : > { %1106 = vmatpush3.bf16.msra.mxu0 %v1105_v45  ;;  %1128 = vmatprep.subr.bf16.mxu1 %v1496_v0  ;;  %v649_v45 = vld [vmem:[#allocation10 + $0x70] sm:$0xff] }
  0xbb   : > { %1131 = vmatprep.subr.bf16.mxu0 %v1496_v0 }
  0xbd   : > { %976 = vmatmul.mubr.f32.vlgmr.msra.gmra.mrb[0].mxu0 %v352_v47  ;;  %1130 = vmatpush3.bf16.msra.mxu1 %v1129_v50  ;;  %v1177_v47 = vpack.c.bf16 %v650_v46, %v649_v45 }
  0xbe   : > { %1045 = vmatprep.mubr.msk.f32.mxu0 %vm1497_vm0, %v1498_v1  ;;  %1155 = vmatprep.subr.bf16.mxu1 %v1496_v0 }
  0xbf   : > { %1133 = vmatpush3.bf16.msra.mxu0 %v1132_v54 }
  0xc0   : > { %1134 = vmatprep.subr.bf16.mxu0 %v1496_v0 }
  0xc3   : > { %1136 = vmatpush3.bf16.msra.mxu0 %v1135_v56 }
  0xc4   : > { %1137 = vmatprep.subr.bf16.mxu0 %v1496_v0 }
  0xc7   : > { %1139 = vmatpush3.bf16.msra.mxu0 %v1138_v59 }
  0xc8   : > { %1140 = vmatprep.subr.bf16.mxu0 %v1496_v0 }
  0xcb   : > { %1142 = vmatpush3.bf16.msra.mxu0 %v1141_v62 }
  0xcc   : > { %1143 = vmatprep.subr.bf16.mxu0 %v1496_v0 }
  0xcf   : > { %1145 = vmatpush3.bf16.msra.mxu0 %v1144_v3 }
  0xd0   : > { %1146 = vmatprep.subr.bf16.mxu0 %v1496_v0 }
  0xd3   : > { %1148 = vmatpush3.bf16.msra.mxu0 %v1147_v6 }
  0xd4   : > { %1149 = vmatprep.subr.bf16.mxu0 %v1496_v0 }
  0xd7   : > { %1151 = vmatpush3.bf16.msra.mxu0 %v1150_v9 }
  0xd8   : > { %1152 = vmatprep.subr.bf16.mxu0 %v1496_v0 }
  0xdb   : > { %1154 = vmatpush3.bf16.msra.mxu0 %v1153_v18 }
 0x190   : > { %v440_v11 = vpop.f32.mrb[0].mxu0 }
 0x191   : > { %v441_v12 = vadd.f32 %v867_v10, %v440_v11  ;;  %v977_v13 = vpop.f32.mrb[1].mxu0 }
 0x193   : > { %v445_v14 = vmul.f32 0.01, %v441_v12  ;;  %vm444_vm1 = vcmp.gt.f32.partialorder %v441_v12, 0.0 }
 0x195   : > { %v446_v15 = vsel %vm444_vm1, %v441_v12, %v445_v14 }
 0x196   : > { %1011 = vmatmul.mubr.f32.vlgmr.msra.gmra.mrb[0].mxu1 %v446_v15 }
 0x197   : > { %1080 = vmatprep.mubr.msk.f32.mxu1 %vm1497_vm0, %v1498_v1  ;;  %1157 = vmatpush3.bf16.msra.mxu1 %v1156_v22  ;;  %v641_v1 = vld [vmem:[#allocation10 + $0x30] sm:$0xff] }
 0x198   : > { %1158 = vmatprep.subr.bf16.mxu1 %v1496_v0  ;;  %v1165_v29 = vpack.c.bf16 %v642_v28, %v641_v1 }
 0x19b   : > { %1160 = vmatpush3.bf16.msra.mxu1 %v1159_v24 }
 0x19c   : > { %1161 = vmatprep.subr.bf16.mxu1 %v1496_v0 }
 0x19f   : > { %1163 = vmatpush3.bf16.msra.mxu1 %v1162_v27 }
 0x1a0   : > { %1164 = vmatprep.subr.bf16.mxu1 %v1496_v0 }
 0x1a3   : > { %1166 = vmatpush3.bf16.msra.mxu1 %v1165_v29 }
 0x1a4   : > { %1167 = vmatprep.subr.bf16.mxu1 %v1496_v0 }
 0x1a7   : > { %1169 = vmatpush3.bf16.msra.mxu1 %v1168_v32 }
 0x1a8   : > { %1170 = vmatprep.subr.bf16.mxu1 %v1496_v0 }
 0x1ab   : > { %1172 = vmatpush3.bf16.msra.mxu1 %v1171_v35 }
 0x1ac   : > { %1173 = vmatprep.subr.bf16.mxu1 %v1496_v0 }
 0x1af   : > { %1175 = vmatpush3.bf16.msra.mxu1 %v1174_v38 }
 0x1b0   : > { %1176 = vmatprep.subr.bf16.mxu1 %v1496_v0  ;;  %v869_v0 = vld [vmem:[%s1895_s4 + $0x2] ss:$0 sm:$0xff] }
 0x1b3   : > { %1178 = vmatpush3.bf16.msra.mxu1 %v1177_v47 }
 0x269   : > { %v534_v40 = vpop.f32.mrb[0].mxu1 }
 0x26a   : > { %v535_v41 = vadd.f32 %v868_v39, %v534_v40  ;;  %v1012_v42 = vpop.f32.mrb[1].mxu1 }
 0x26c   : > { %vm538_vm2 = vcmp.gt.f32.partialorder %v535_v41, 0.0  ;;  %v539_v43 = vmul.f32 0.01, %v535_v41 }
 0x26e   : > { %v540_v44 = vsel %vm538_vm2, %v535_v41, %v539_v43 }
 0x26f   : > { %1046 = vmatmul.mubr.f32.vlgmr.msra.gmra.mrb[2].mxu0 %v540_v44 }
 0x342   : > { %v628_v48 = vpop.f32.mrb[2].mxu0 }
 0x343   : > { %v629_v49 = vadd.f32 %v869_v0, %v628_v48  ;;  %v1047_v50 = vpop.f32.mrb[3].mxu0 }
 0x345   : > { %vm632_vm3 = vcmp.gt.f32.partialorder %v629_v49, 0.0  ;;  %v633_v51 = vmul.f32 0.01, %v629_v49 }
 0x347   : > { %v634_v52 = vsel %vm632_vm3, %v629_v49, %v633_v51 }
 0x348   : > { %1081 = vmatmul.mubr.f32.vlgmr.msra.gmra.mrb[2].mxu1 %v634_v52 }
 0x41b   : > { %v724_v54 = vpop.f32.mrb[2].mxu1 }
 0x41c   : > { %v725_v55 = vadd.f32 %v870_v53, %v724_v54  ;;  %v1082_v56 = vpop.f32.mrb[3].mxu1 }
 0x41e   : > { %728 = vst [vmem:[%s351_s17] sm:$0xff] %v725_v55 }
 0x41f   : > { %1426 = shalt.err (!%p1423_p0)
}
 0x420   : > { %s1427_s22 = scalar_lea.hbm %s1847_s23, 128  ;;  %s1431_s10 = scalar_lea.hbm %s1898_s7, 256 }
 0x421   : > { %p1428_p2 = scmp.ne.s32.totalorder %s1847_s23, %s1427_s22  ;;  %p1432_p10 = scmp.lt.u32.totalorder %s1847_s23, %s1898_s7 }
 0x422   : > { %p1433_p11 = scmp.lt.u32.totalorder %s1431_s10, %s1427_s22  ;;  %p1435_p6 = scmp.lt.u32.totalorder %s1427_s22, %s1847_s23 }
 0x423   : > { %p1429_p8 = pnand %p1428_p2, %p1916_p5 }
 0x424   : > { %p1434_p1 = por %p1433_p11, %p1432_p10 }
 0x425   : > { %p1430_p4 = pneg %p1429_p8 }
 0x426   : > { %p1436_p7 = por %p1435_p6, %p1434_p1 }
 0x428   : > { %p1437_p9 = pnand %p1436_p7, %p1430_p4 }
 0x42a   : > { %1440 = shalt.err (!%p1437_p9)
}
 0x42b   : > { %1197 = dma.vmem_to_hbm [thread:$0]  (%p1916_p5), %s1849_s14, 128, %s1847_s23, %s730_s13  }
 0x42c PF: > { %s755_s20 = sand.u32 1, %s1475_s24   ;;  %p1917_p12 = scmp.ne.s32.totalorder %s1909_s15, 0 }
 0x42d   : > { %p1918_p3 = scmp.ge.s32.totalorder %s1487_s27, 2  ;;  %s756_s8 = scalar_lea.sflag [#allocation4], %s755_s20 }
 0x42f   : > { %p1217_p13 = pnand %p1918_p3, %p1917_p12 }
 0x431   : > { %1470 = dma.done.wait (!%p1217_p13), %s756_s8, 128  }
 0x432   : > { %1472 = vsyncadd (!%p1217_p13), %s756_s8, 4294967168  ;;  %p22_p0 = scmp.ge.s32.totalorder %s1692_s19, 4   ;;  %s1919_s24 = smov %s1479_s25 }
 0x433   : > { %s1920_s25 = smov %s1483_s26  ;;  %s1921_s26 = smov %s1703_s12 }
 0x434   : > { %s1922_s27 = smov %s1692_s19  ;;  %24 = sbr.rel (!%p22_p0) target bundleno = 7 (0x7), region = 109 }
 0x43b   :  { %761 = vsyncpa [#allocation3], 1 }
 0x43c   :  { %763 = vsyncpa [#allocation3 + $0x1], 1 }
 0x43d   :  { %764 = vsyncpa [#allocation6], 1 }
 0x43e   :  { %765 = vsyncpa [#allocation9], 1 }
 0x43f   :  { %766 = vsyncpa [#allocation4], 1 }
 0x440   :  { %768 = vsyncpa [#allocation4 + $0x1], 1 }

// kernel: tpu_custom_call.1
= control target key start
LH: loop header
LB: loop body
LE: loop exit
PB: predicated region body
PF: predicated region fallthrough
CT: control target
= control target key end

     0   :  { %12 = vsyncpa [#allocation3], 0  ;;  %s1891_s0 = inlined_call_operand.hbm [shape: f32[16,128], index: 0, kind: input, shape index: {}]   ;;  %s1892_s1 = inlined_call_operand.hbm [shape: f32[128,128], index: 1, kind: input, shape index: {}]   ;;  %s1893_s2 = inlined_call_operand.hbm [shape: f32[128,128], index: 2, kind: input, shape index: {}]   ;;  %s1894_s3 = inlined_call_operand.hbm [shape: f32[128,128], index: 3, kind: input, shape index: {}]   ;;  %s1895_s4 = inlined_call_operand.vmem [shape: f32[3,128], index: 4, kind: input, shape index: {}]   ;;  %s1896_s5 = inlined_call_operand.hbm [shape: f32[128,128], index: 5, kind: input, shape index: {}]   ;;  %s1897_s6 = inlined_call_operand.vmem [shape: f32[1,128], index: 6, kind: input, shape index: {}]   ;;  %s1898_s7 = inlined_call_operand.hbm [shape: f32[16,128], index: 7, kind: output, shape index: {}]  }
   0x1   :  { %14 = vsyncpa [#allocation3 + $0x1], 0 }
   0x2   :  { %15 = vsyncpa [#allocation6], 0 }
   0x3   :  { %16 = vsyncpa [#allocation9], 0 }
   0x4   :  { %17 = vsyncpa [#allocation4], 0 }
   0x5   :  { %19 = vsyncpa [#allocation4 + $0x1], 0  ;;  %s1540_s24 = smov 0   ;;  %s1542_s25 = smov 0  }
   0x6   :  { %s1544_s26 = smov 0   ;;  %s1546_s27 = smov 0  }
   0x7 LB: > { %s1489_s28 = smov [#allocation5]   ;;  %s1561_s30 = sadd.s32 4294967295, %s1487_s27   ;;  %s1487_s27 = sphi %s1546_s27, %s1922_s27   ;;  %s1483_s26 = sphi %s1544_s26, %s1921_s26   ;;  %s1479_s25 = sphi %s1542_s25, %s1920_s25   ;;  %s1475_s24 = sphi %s1540_s24, %s1919_s24  }
   0x8   : > { %s220_s29 = sshll.u32 %s1489_s28, 4  ;;  %p852_p0 = scmp.ge.s32.totalorder %s1487_s27, 1  ;;  %s1566_s29 = int_to_ptr.vmem [resolvable:$true] %s220_s29 }
   0x9   : > { %p1899_p1 = scmp.eq.s32.totalorder %s1561_s30, 0  ;;  %p208_p2 = scmp.lt.s32.totalorder %s1487_s27, 3 }
   0xa   : > { %s1490_s9 = smov [#allocation8]   ;;  %s1491_s12 = smov [#allocation7]  }
   0xb   : > { %p1568_p3 = pnand %p852_p0, %p208_p2  ;;  %s246_s10 = sshll.u32 %s1490_s9, 4  ;;  %s1581_s10 = int_to_ptr.vmem [resolvable:$true] %s246_s10 }
   0xc   : > { %s233_s13 = sshll.u32 %s1491_s12, 4  ;;  %s1271_s16 = scalar_lea.hbm %s1892_s1, 2048  ;;  %s1583_s13 = int_to_ptr.vmem [resolvable:$true] %s233_s13 }
   0xd   : > { %s1902_s8 = scalar_select %p1568_p3, 1, 0 }
   0xe   : > { %p1199_p5 = pneg %p1568_p3  ;;  %p1272_p7 = scmp.ne.s32.totalorder %s1892_s1, %s1271_s16 }
   0xf   : > { %p1278_p11 = scmp.lt.u32.totalorder %s1271_s16, %s1892_s1 }
  0x10   : > { %p1577_p6 = pnand %p1199_p5, %p1899_p1 }
  0x12   : > { %p1593_p8 = pneg %p1577_p6 }
  0x14   : > { %p1274_p9 = pnand %p1593_p8, %p1272_p7 }
  0x16   : > { %p1275_p10 = pneg %p1274_p9 }
  0x18   : > { %p1280_p12 = pnand %p1278_p11, %p1275_p10 }
  0x1a   : > { %1283 = shalt.err (!%p1280_p12)
}
  0x1b   : > { %s1284_s22 = scalar_lea.vmem %s1566_s29, 2048  ;;  %p1292_p5 = scmp.lt.s32.totalorder %s1566_s29, %s1566_s29 }
  0x1c   : > { %p1285_p13 = scmp.ne.s32.totalorder %s1566_s29, %s1284_s22  ;;  %p1293_p4 = scmp.lt.s32.totalorder %s1284_s22, %s1284_s22 }
  0x1e   : > { %p1287_p0 = pnand %p1285_p13, %p1593_p8  ;;  %p1294_p7 = por %p1293_p4, %p1292_p5 }
  0x20   : > { %p1288_p2 = pneg %p1287_p0 }
  0x22   : > { %p1295_p9 = pnand %p1294_p7, %p1288_p2 }
  0x24   : > { %1298 = shalt.err (!%p1295_p9)
}
  0x25   : > { %s1492_s23 = smov 128   ;;  %s1493_s28 = smov 8  }
  0x26   : > { %1202 = dma.hbm_to_vmem [thread:$0]  (!%p1577_p6), %s1892_s1, 2048, %s1566_s29, [#allocation6], %s1492_s23, %s1492_s23, %s1493_s28  }
  0x27   : > { %s1299_s16 = scalar_lea.hbm %s1894_s3, 2048 }
  0x28   : > { %p1300_p4 = scmp.ne.s32.totalorder %s1894_s3, %s1299_s16  ;;  %p1306_p12 = scmp.lt.u32.totalorder %s1299_s16, %s1894_s3 }
  0x2a   : > { %p1302_p10 = pnand %p1300_p4, %p1593_p8 }
  0x2c   : > { %p1303_p11 = pneg %p1302_p10 }
  0x2e   : > { %p1308_p13 = pnand %p1306_p12, %p1303_p11 }
  0x30   : > { %1311 = shalt.err (!%p1308_p13)
}
  0x31   : > { %s1312_s29 = scalar_lea.vmem %s1581_s10, 2048  ;;  %p1320_p7 = scmp.lt.s32.totalorder %s1581_s10, %s1581_s10 }
  0x32   : > { %p1313_p0 = scmp.ne.s32.totalorder %s1581_s10, %s1312_s29  ;;  %p1321_p9 = scmp.lt.s32.totalorder %s1312_s29, %s1312_s29 }
  0x34   : > { %p1315_p2 = pnand %p1313_p0, %p1593_p8  ;;  %p1322_p4 = por %p1321_p9, %p1320_p7 }
  0x36   : > { %p1316_p5 = pneg %p1315_p2 }
  0x38   : > { %p1323_p10 = pnand %p1322_p4, %p1316_p5 }
  0x3a   : > { %1326 = shalt.err (!%p1323_p10)
}
  0x3b   : > { %1208 = dma.hbm_to_vmem [thread:$0]  (!%p1577_p6), %s1894_s3, 2048, %s1581_s10, [#allocation9], %s1492_s23, %s1492_s23, %s1493_s28  }
  0x3c   : > { %s1327_s15 = scalar_lea.hbm %s1893_s2, 2048 }
  0x3d   : > { %p1328_p11 = scmp.ne.s32.totalorder %s1893_s2, %s1327_s15  ;;  %p1334_p0 = scmp.lt.u32.totalorder %s1327_s15, %s1893_s2 }
  0x3f   : > { %p1330_p12 = pnand %p1328_p11, %p1593_p8 }
  0x41   : > { %p1331_p13 = pneg %p1330_p12 }
  0x43   : > { %p1336_p2 = pnand %p1334_p0, %p1331_p13 }
  0x45   : > { %1339 = shalt.err (!%p1336_p2)
}
  0x46   : > { %s1340_s10 = scalar_lea.vmem %s1583_s13, 2048  ;;  %p1348_p4 = scmp.lt.s32.totalorder %s1583_s13, %s1583_s13 }
  0x47   : > { %p1341_p5 = scmp.ne.s32.totalorder %s1583_s13, %s1340_s10  ;;  %p1349_p10 = scmp.lt.s32.totalorder %s1340_s10, %s1340_s10 }
  0x49   : > { %p1343_p7 = pnand %p1341_p5, %p1593_p8  ;;  %p1350_p11 = por %p1349_p10, %p1348_p4 }
  0x4b   : > { %p1344_p9 = pneg %p1343_p7 }
  0x4d   : > { %p1351_p12 = pnand %p1350_p11, %p1344_p9 }
  0x4f   : > { %1354 = shalt.err (!%p1351_p12)
}
  0x50   : > { %1205 = dma.hbm_to_vmem [thread:$0]  (!%p1577_p6), %s1893_s2, 2048, %s1583_s13, [#allocation6], %s1492_s23, %s1492_s23, %s1493_s28  }
  0x51   : > { %s1494_s22 = smov [#allocation10]   ;;  %s1355_s15 = scalar_lea.hbm %s1896_s5, 2048 }
  0x52   : > { %s262_s9 = sshll.u32 %s1494_s22, 4  ;;  %p1356_p13 = scmp.ne.s32.totalorder %s1896_s5, %s1355_s15  ;;  %s263_s9 = int_to_ptr.vmem [resolvable:$true] %s262_s9 }
  0x53   : > { %p1362_p5 = scmp.lt.u32.totalorder %s1355_s15, %s1896_s5 }
  0x54   : > { %p1358_p0 = pnand %p1356_p13, %p1593_p8 }
  0x56   : > { %p1359_p2 = pneg %p1358_p0 }
  0x58   : > { %p1364_p7 = pnand %p1362_p5, %p1359_p2 }
  0x5a   : > { %1367 = shalt.err (!%p1364_p7)
}
  0x5b   : > { %s1368_s13 = scalar_lea.vmem %s263_s9, 2048  ;;  %p1376_p11 = scmp.lt.s32.totalorder %s263_s9, %s263_s9 }
  0x5c   : > { %p1369_p9 = scmp.ne.s32.totalorder %s263_s9, %s1368_s13  ;;  %p1377_p12 = scmp.lt.s32.totalorder %s1368_s13, %s1368_s13 }
  0x5e   : > { %p1371_p4 = pnand %p1369_p9, %p1593_p8  ;;  %p1378_p1 = por %p1377_p12, %p1376_p11 }
  0x60   : > { %p1372_p10 = pneg %p1371_p4 }
  0x62   : > { %p1379_p3 = pnand %p1378_p1, %p1372_p10 }
  0x64   : > { %1382 = shalt.err (!%p1379_p3)
}
  0x65   : > { %1211 = dma.hbm_to_vmem [thread:$0]  (!%p1577_p6), %s1896_s5, 2048, %s263_s9, [#allocation9], %s1492_s23, %s1492_s23, %s1493_s28  }
  0x66   : > { %s851_s11 = sadd.s32 4294967294, %s1487_s27   ;;  %s1692_s19 = sadd.s32 1, %s1487_s27  }
  0x67   : > { %s29_s29 = ssub.s32 %s1487_s27, %s1692_s19  ;;  %s32_s22 = sadd.s32 1, %s1483_s26 }
  0x68   : > { %p30_p1 = scmp.eq.s32.totalorder %s29_s29, 0  ;;  %p39_p3 = scmp.ne.s32.totalorder %s1483_s26, %s1479_s25 }
  0x69   : > { %p40_p8 = scmp.eq.s32.totalorder %s1487_s27, 0  ;;  %p45_p13 = scmp.ne.s32.totalorder %s1479_s25, %s1475_s24 }
  0x6a   : > { %s1703_s12 = scalar_select %p30_p1, %s1483_s26, %s32_s22  }
  0x6b   : > { %p1705_p0 = por %p40_p8, %p39_p3  ;;  %p1906_p2 = scmp.eq.s32.totalorder %s1561_s30, 0 }
  0x6c   : > { %p195_p5 = scmp.eq.s32.totalorder %s1561_s30, 1  ;;  %p201_p7 = scmp.eq.s32.totalorder %s851_s11, 1 }
  0x6d   : > { %p1711_p6 = por %p1906_p2, %p45_p13  ;;  %p1224_p9 = scmp.lt.s32.totalorder %s1487_s27, 2 }
  0x6e   : > { %s279_s28 = sand.u32 1, %s1483_s26   ;;  %p1718_p4 = por %p195_p5, %p39_p3 }
  0x6f   : > { %p1722_p10 = por %p201_p7, %p45_p13  ;;  %s858_s16 = sshll.u32 %s279_s28, 3 }
  0x70   : > { %s1908_s9 = scalar_select %p1718_p4, 1, 0 }
  0x71   : > { %s1909_s15 = scalar_select %p1722_p10, 1, 0 }
  0x72   : > { %s859_s17 = sshll.u32 %s1487_s27, 7  ;;  %s283_s10 = scalar_lea.vmem [#allocation2], %s858_s16 }
  0x73   : > { %s1730_s13 = scalar_lea.hbm %s1891_s0, %s859_s17  ;;  %s290_s21 = sshll.u32 %s283_s10, 4  ;;  %s1732_s21 = int_to_ptr.vmem [resolvable:$true] %s290_s21 }
  0x74   : > { %p1736_p11 = pnand %p1224_p9, %p1705_p0  ;;  %s280_s29 = scalar_lea.sflag [#allocation3], %s279_s28 }
  0x75   : > { %s1383_s22 = scalar_lea.hbm %s1730_s13, 128  ;;  %s1388_s18 = scalar_lea.hbm %s1891_s0, 256 }
  0x76   : > { %p1384_p12 = scmp.ne.s32.totalorder %s1730_s13, %s1383_s22  ;;  %p1385_p1 = pneg %p1736_p11 }
  0x77   : > { %p1389_p13 = scmp.lt.u32.totalorder %s1730_s13, %s1891_s0  ;;  %p1390_p0 = scmp.lt.u32.totalorder %s1388_s18, %s1383_s22 }
  0x78   : > { %p1386_p3 = pnand %p1385_p1, %p1384_p12  ;;  %p1392_p5 = scmp.lt.u32.totalorder %s1383_s22, %s1730_s13 }
  0x79   : > { %p1391_p2 = por %p1390_p0, %p1389_p13 }
  0x7a   : > { %p1387_p8 = pneg %p1386_p3 }
  0x7b   : > { %p1393_p7 = por %p1392_p5, %p1391_p2 }
  0x7d   : > { %p1394_p9 = pnand %p1393_p7, %p1387_p8 }
  0x7f   : > { %1397 = shalt.err (!%p1394_p9)
}
  0x80   : > { %s1398_s28 = scalar_lea.vmem %s1732_s21, 128  ;;  %s1495_s10 = smov [#allocation2]  }
  0x81   : > { %p1399_p12 = scmp.ne.s32.totalorder %s1732_s21, %s1398_s28  ;;  %s1403_s16 = sshll.u32 %s1495_s10, 4  ;;  %s1404_s16 = int_to_ptr.vmem [resolvable:$false] %s1403_s16 }
  0x82   : > { %s1405_s17 = scalar_lea.vmem %s1404_s16, 256  ;;  %p1406_p4 = scmp.lt.s32.totalorder %s1732_s21, %s1404_s16 }
  0x83   : > { %p1401_p3 = pnand %p1399_p12, %p1385_p1  ;;  %p1407_p13 = scmp.lt.s32.totalorder %s1405_s17, %s1398_s28 }
  0x85   : > { %p1402_p10 = pneg %p1401_p3  ;;  %p1408_p0 = por %p1407_p13, %p1406_p4 }
  0x87   : > { %p1409_p2 = pnand %p1408_p0, %p1402_p10 }
  0x89   : > { %1412 = shalt.err (!%p1409_p2)
}
  0x8a   : > { %1215 = dma.hbm_to_vmem [thread:$0]  (!%p1736_p11), %s1730_s13, 128, %s1732_s21, %s280_s29  }
  0x8b   : > { %p1911_p8 = scmp.ne.s32.totalorder %s1902_s8, 0 }
  0x8c   : > { %s1768_s22 = sand.u32 (!%p1911_p8), 1, %s1479_s25  }
  0x8d   : > { %299 = sbr.rel (%p1911_p8) target bundleno = 1068 (0x42c), region = 48  ;;  %s861_s18 = sshll.u32 (!%p1911_p8), %s1768_s22, 3 }
  0x8e   : > { %s302_s14 = scalar_lea.sflag (!%p1911_p8), [#allocation3], %s1768_s22  ;;  %s1774_s20 = scalar_lea.vmem (!%p1911_p8), [#allocation2], %s861_s18 }
  0x94   : > { %1458 = dma.done.wait (%p1711_p6), %s302_s14, 128  }
  0x95   : > { %1460 = vsyncadd (%p1711_p6), %s302_s14, 4294967168  ;;  %p1912_p4 = scmp.eq.s32.totalorder %s1561_s30, 0 }
  0x97   : > { %1462 = dma.done.wait (%p1912_p4), [#allocation6], 4096   ;;  %p1913_p10 = pmov %p1912_p4 }
  0x98   : > { %p1914_p11 = pmov %p1912_p4 }
  0x99   : > { %1464 = vsyncadd (%p1913_p10), [#allocation6], 4294963200 }
  0x9a   : > { %1466 = dma.done.wait (%p1914_p11), [#allocation9], 4096   ;;  %p1915_p1 = pmov %p1912_p4 }
  0x9b   : > { %v1496_v0 = vmov 0.0|0.0   ;;  %vm1497_vm0 = vmmov 0   ;;  %v1498_v1 = vmov 0.0   ;;  %v353_v2 = vld [vmem:[#allocation5] sm:$0xff]  ;;  %v354_v3 = vld [vmem:[#allocation5 + $0x8] sm:$0xff]  ;;  %v355_v4 = vld [vmem:[#allocation5 + $0x10] sm:$0xff] }
  0x9c   : > { %1468 = vsyncadd (%p1915_p1), [#allocation9], 4294963200  ;;  %1083 = vmatprep.subr.bf16.mxu0 %v1496_v0  ;;  %975 = vmatprep.mubr.msk.f32.mxu0 %vm1497_vm0, %v1498_v1  ;;  %v1084_v5 = vpack.c.bf16 %v354_v3, %v353_v2  ;;  %v356_v6 = vld [vmem:[#allocation5 + $0x18] sm:$0xff]  ;;  %v357_v8 = vld [vmem:[#allocation5 + $0x20] sm:$0xff]  ;;  %s872_s16 = sshll.u32 %s1561_s30, 7  ;;  %s351_s17 = scalar_lea.vmem [#allocation11], %s861_s18 }
  0x9d   : > { %1107 = vmatprep.subr.bf16.mxu1 %v1496_v0  ;;  %1010 = vmatprep.mubr.msk.f32.mxu1 %vm1497_vm0, %v1498_v1  ;;  %v1087_v7 = vpack.c.bf16 %v356_v6, %v355_v4  ;;  %v358_v9 = vld [vmem:[#allocation5 + $0x28] sm:$0xff]  ;;  %v447_v10 = vld [vmem:[#allocation7] sm:$0xff]  ;;  %v449_v12 = vld [vmem:[#allocation7 + $0x10] sm:$0xff]  ;;  %s743_s14 = sshll.u32 %s351_s17, 4  ;;  %s1847_s23 = scalar_lea.hbm %s1898_s7, %s872_s16  ;;  %s1849_s14 = int_to_ptr.vmem [resolvable:$true] %s743_s14 }
  0x9e   : > { %1085 = vmatpush3.bf16.msra.mxu0 %v1084_v5  ;;  %v448_v11 = vld [vmem:[#allocation7 + $0x8] sm:$0xff]  ;;  %v450_v13 = vld [vmem:[#allocation7 + $0x18] sm:$0xff]  ;;  %v1090_v14 = vpack.c.bf16 %v358_v9, %v357_v8  ;;  %v359_v16 = vld [vmem:[#allocation5 + $0x30] sm:$0xff]  ;;  %s730_s13 = scalar_lea.sflag [#allocation4], %s1768_s22  ;;  %s1413_s21 = scalar_lea.vmem %s1849_s14, 128 }
  0x9f   : > { %1086 = vmatprep.subr.bf16.mxu0 %v1496_v0  ;;  %v1108_v15 = vpack.c.bf16 %v448_v11, %v447_v10  ;;  %v360_v17 = vld [vmem:[#allocation5 + $0x38] sm:$0xff]  ;;  %v1111_v18 = vpack.c.bf16 %v450_v13, %v449_v12  ;;  %v451_v19 = vld [vmem:[#allocation7 + $0x20] sm:$0xff]  ;;  %v452_v20 = vld [vmem:[#allocation7 + $0x28] sm:$0xff]  ;;  %p1414_p6 = scmp.ne.s32.totalorder %s1849_s14, %s1413_s21  ;;  %p1916_p5 = scmp.ne.s32.totalorder %s1908_s9, 0 }
  0xa0   : > { %v1093_v21 = vpack.c.bf16 %v360_v17, %v359_v16  ;;  %v361_v22 = vld [vmem:[#allocation5 + $0x40] sm:$0xff]  ;;  %v362_v23 = vld [vmem:[#allocation5 + $0x48] sm:$0xff]  ;;  %v1114_v24 = vpack.c.bf16 %v452_v20, %v451_v19  ;;  %v453_v25 = vld [vmem:[#allocation7 + $0x30] sm:$0xff]  ;;  %s1499_s30 = smov [#allocation11]  }
  0xa1   : > { %1109 = vmatpush3.bf16.msra.mxu1 %v1108_v15  ;;  %v454_v26 = vld [vmem:[#allocation7 + $0x38] sm:$0xff]  ;;  %v1096_v27 = vpack.c.bf16 %v362_v23, %v361_v22  ;;  %v363_v28 = vld [vmem:[#allocation5 + $0x50] sm:$0xff]  ;;  %v455_v31 = vld [vmem:[#allocation7 + $0x40] sm:$0xff]  ;;  %p1415_p7 = pnand %p1414_p6, %p1916_p5  ;;  %s1417_s18 = sshll.u32 %s1499_s30, 4  ;;  %s1418_s18 = int_to_ptr.vmem [resolvable:$false] %s1417_s18 }
  0xa2   : > { %1088 = vmatpush3.bf16.msra.mxu0 %v1087_v7  ;;  %1110 = vmatprep.subr.bf16.mxu1 %v1496_v0  ;;  %v364_v29 = vld [vmem:[#allocation5 + $0x58] sm:$0xff]  ;;  %v1117_v30 = vpack.c.bf16 %v454_v26, %v453_v25  ;;  %v456_v32 = vld [vmem:[#allocation7 + $0x48] sm:$0xff]  ;;  %v365_v34 = vld [vmem:[#allocation5 + $0x60] sm:$0xff]  ;;  %s1419_s11 = scalar_lea.vmem %s1418_s18, 256  ;;  %p1420_p12 = scmp.lt.s32.totalorder %s1849_s14, %s1418_s18 }
  0xa3   : > { %1089 = vmatprep.subr.bf16.mxu0 %v1496_v0  ;;  %v1099_v33 = vpack.c.bf16 %v364_v29, %v363_v28  ;;  %v366_v35 = vld [vmem:[#allocation5 + $0x68] sm:$0xff]  ;;  %v1120_v36 = vpack.c.bf16 %v456_v32, %v455_v31  ;;  %v457_v37 = vld [vmem:[#allocation7 + $0x50] sm:$0xff]  ;;  %v458_v38 = vld [vmem:[#allocation7 + $0x58] sm:$0xff]  ;;  %p1416_p9 = pneg %p1415_p7  ;;  %p1421_p3 = scmp.lt.s32.totalorder %s1419_s11, %s1413_s21 }
  0xa4   : > { %v1102_v39 = vpack.c.bf16 %v366_v35, %v365_v34  ;;  %v367_v40 = vld [vmem:[#allocation5 + $0x70] sm:$0xff]  ;;  %v368_v41 = vld [vmem:[#allocation5 + $0x78] sm:$0xff]  ;;  %v1123_v42 = vpack.c.bf16 %v458_v38, %v457_v37  ;;  %v459_v43 = vld [vmem:[#allocation7 + $0x60] sm:$0xff] }
  0xa5   : > { %1112 = vmatpush3.bf16.msra.mxu1 %v1111_v18  ;;  %v460_v44 = vld [vmem:[#allocation7 + $0x68] sm:$0xff]  ;;  %v1105_v45 = vpack.c.bf16 %v368_v41, %v367_v40  ;;  %v352_v47 = vld [vmem:[%s1774_s20] sm:$0xff]  ;;  %v541_v51 = vld [vmem:[#allocation8] sm:$0xff]  ;;  %p1422_p13 = por %p1421_p3, %p1420_p12 }
  0xa6   : > { %1091 = vmatpush3.bf16.msra.mxu0 %v1090_v14  ;;  %1113 = vmatprep.subr.bf16.mxu1 %v1496_v0  ;;  %v1126_v46 = vpack.c.bf16 %v460_v44, %v459_v43  ;;  %v461_v48 = vld [vmem:[#allocation7 + $0x70] sm:$0xff]  ;;  %v462_v49 = vld [vmem:[#allocation7 + $0x78] sm:$0xff]  ;;  %v542_v52 = vld [vmem:[#allocation8 + $0x8] sm:$0xff] }
  0xa7   : > { %1092 = vmatprep.subr.bf16.mxu0 %v1496_v0  ;;  %v1129_v50 = vpack.c.bf16 %v462_v49, %v461_v48  ;;  %v543_v53 = vld [vmem:[#allocation8 + $0x10] sm:$0xff]  ;;  %v1132_v54 = vpack.c.bf16 %v542_v52, %v541_v51  ;;  %v544_v55 = vld [vmem:[#allocation8 + $0x18] sm:$0xff]  ;;  %v545_v57 = vld [vmem:[#allocation8 + $0x20] sm:$0xff]  ;;  %p1423_p0 = pnand %p1422_p13, %p1416_p9 }
  0xa8   : > { %v1135_v56 = vpack.c.bf16 %v544_v55, %v543_v53  ;;  %v546_v58 = vld [vmem:[#allocation8 + $0x28] sm:$0xff]  ;;  %v547_v60 = vld [vmem:[#allocation8 + $0x30] sm:$0xff]  ;;  %v548_v61 = vld [vmem:[#allocation8 + $0x38] sm:$0xff] }
  0xa9   : > { %1115 = vmatpush3.bf16.msra.mxu1 %v1114_v24  ;;  %v1138_v59 = vpack.c.bf16 %v546_v58, %v545_v57  ;;  %v1141_v62 = vpack.c.bf16 %v548_v61, %v547_v60  ;;  %v549_v63 = vld [vmem:[#allocation8 + $0x40] sm:$0xff]  ;;  %v550_v2 = vld [vmem:[#allocation8 + $0x48] sm:$0xff]  ;;  %v551_v4 = vld [vmem:[#allocation8 + $0x50] sm:$0xff] }
  0xaa   : > { %1094 = vmatpush3.bf16.msra.mxu0 %v1093_v21  ;;  %1116 = vmatprep.subr.bf16.mxu1 %v1496_v0  ;;  %v1144_v3 = vpack.c.bf16 %v550_v2, %v549_v63  ;;  %v552_v5 = vld [vmem:[#allocation8 + $0x58] sm:$0xff]  ;;  %v553_v7 = vld [vmem:[#allocation8 + $0x60] sm:$0xff]  ;;  %v554_v8 = vld [vmem:[#allocation8 + $0x68] sm:$0xff] }
  0xab   : > { %1095 = vmatprep.subr.bf16.mxu0 %v1496_v0  ;;  %v1147_v6 = vpack.c.bf16 %v552_v5, %v551_v4  ;;  %v1150_v9 = vpack.c.bf16 %v554_v8, %v553_v7  ;;  %v867_v10 = vld [vmem:[%s1895_s4] ss:$0 sm:$0xff]  ;;  %v556_v17 = vld [vmem:[#allocation8 + $0x78] sm:$0xff]  ;;  %v635_v19 = vld [vmem:[#allocation10] sm:$0xff] }
  0xac   : > { %v555_v16 = vld [vmem:[#allocation8 + $0x70] sm:$0xff]  ;;  %v636_v20 = vld [vmem:[#allocation10 + $0x8] sm:$0xff]  ;;  %v638_v23 = vld [vmem:[#allocation10 + $0x18] sm:$0xff] }
  0xad   : > { %1118 = vmatpush3.bf16.msra.mxu1 %v1117_v30  ;;  %v1153_v18 = vpack.c.bf16 %v556_v17, %v555_v16  ;;  %v637_v21 = vld [vmem:[#allocation10 + $0x10] sm:$0xff]  ;;  %v1156_v22 = vpack.c.bf16 %v636_v20, %v635_v19  ;;  %v639_v25 = vld [vmem:[#allocation10 + $0x20] sm:$0xff]  ;;  %v640_v26 = vld [vmem:[#allocation10 + $0x28] sm:$0xff] }
  0xae   : > { %1097 = vmatpush3.bf16.msra.mxu0 %v1096_v27  ;;  %1119 = vmatprep.subr.bf16.mxu1 %v1496_v0  ;;  %v1159_v24 = vpack.c.bf16 %v638_v23, %v637_v21  ;;  %v1162_v27 = vpack.c.bf16 %v640_v26, %v639_v25  ;;  %v642_v28 = vld [vmem:[#allocation10 + $0x38] sm:$0xff]  ;;  %v643_v30 = vld [vmem:[#allocation10 + $0x40] sm:$0xff]  ;;  %v644_v31 = vld [vmem:[#allocation10 + $0x48] sm:$0xff] }
  0xaf   : > { %1098 = vmatprep.subr.bf16.mxu0 %v1496_v0  ;;  %v1168_v32 = vpack.c.bf16 %v644_v31, %v643_v30  ;;  %v646_v34 = vld [vmem:[#allocation10 + $0x58] sm:$0xff]  ;;  %v648_v37 = vld [vmem:[#allocation10 + $0x68] sm:$0xff]  ;;  %v870_v53 = vld [vmem:[%s1897_s6] ss:$0 sm:$0xff] }
  0xb1   : > { %1121 = vmatpush3.bf16.msra.mxu1 %v1120_v36  ;;  %v647_v36 = vld [vmem:[#allocation10 + $0x60] sm:$0xff] }
  0xb2   : > { %1100 = vmatpush3.bf16.msra.mxu0 %v1099_v33  ;;  %1122 = vmatprep.subr.bf16.mxu1 %v1496_v0  ;;  %v645_v33 = vld [vmem:[#allocation10 + $0x50] sm:$0xff]  ;;  %v1174_v38 = vpack.c.bf16 %v648_v37, %v647_v36 }
  0xb3   : > { %1101 = vmatprep.subr.bf16.mxu0 %v1496_v0  ;;  %v1171_v35 = vpack.c.bf16 %v646_v34, %v645_v33 }
  0xb5   : > { %1124 = vmatpush3.bf16.msra.mxu1 %v1123_v42 }
  0xb6   : > { %1103 = vmatpush3.bf16.msra.mxu0 %v1102_v39  ;;  %1125 = vmatprep.subr.bf16.mxu1 %v1496_v0  ;;  %v868_v39 = vld [vmem:[%s1895_s4 + $0x1] ss:$0 sm:$0xff] }
  0xb7   : > { %1104 = vmatprep.subr.bf16.mxu0 %v1496_v0 }
  0xb9   : > { %1127 = vmatpush3.bf16.msra.mxu1 %v1126_v46  ;;  %v650_v46 = vld [vmem:[#allocation10 + $0x78] sm:$0xff] }
  0xba   : > { %1106 = vmatpush3.bf16.msra.mxu0 %v1105_v45  ;;  %1128 = vmatprep.subr.bf16.mxu1 %v1496_v0  ;;  %v649_v45 = vld [vmem:[#allocation10 + $0x70] sm:$0xff] }
  0xbb   : > { %1131 = vmatprep.subr.bf16.mxu0 %v1496_v0 }
  0xbd   : > { %976 = vmatmul.mubr.f32.vlgmr.msra.gmra.mrb[0].mxu0 %v352_v47  ;;  %1130 = vmatpush3.bf16.msra.mxu1 %v1129_v50  ;;  %v1177_v47 = vpack.c.bf16 %v650_v46, %v649_v45 }
  0xbe   : > { %1045 = vmatprep.mubr.msk.f32.mxu0 %vm1497_vm0, %v1498_v1  ;;  %1155 = vmatprep.subr.bf16.mxu1 %v1496_v0 }
  0xbf   : > { %1133 = vmatpush3.bf16.msra.mxu0 %v1132_v54 }
  0xc0   : > { %1134 = vmatprep.subr.bf16.mxu0 %v1496_v0 }
  0xc3   : > { %1136 = vmatpush3.bf16.msra.mxu0 %v1135_v56 }
  0xc4   : > { %1137 = vmatprep.subr.bf16.mxu0 %v1496_v0 }
  0xc7   : > { %1139 = vmatpush3.bf16.msra.mxu0 %v1138_v59 }
  0xc8   : > { %1140 = vmatprep.subr.bf16.mxu0 %v1496_v0 }
  0xcb   : > { %1142 = vmatpush3.bf16.msra.mxu0 %v1141_v62 }
  0xcc   : > { %1143 = vmatprep.subr.bf16.mxu0 %v1496_v0 }
  0xcf   : > { %1145 = vmatpush3.bf16.msra.mxu0 %v1144_v3 }
  0xd0   : > { %1146 = vmatprep.subr.bf16.mxu0 %v1496_v0 }
  0xd3   : > { %1148 = vmatpush3.bf16.msra.mxu0 %v1147_v6 }
  0xd4   : > { %1149 = vmatprep.subr.bf16.mxu0 %v1496_v0 }
  0xd7   : > { %1151 = vmatpush3.bf16.msra.mxu0 %v1150_v9 }
  0xd8   : > { %1152 = vmatprep.subr.bf16.mxu0 %v1496_v0 }
  0xdb   : > { %1154 = vmatpush3.bf16.msra.mxu0 %v1153_v18 }
 0x190   : > { %v440_v11 = vpop.f32.mrb[0].mxu0 }
 0x191   : > { %v441_v12 = vadd.f32 %v867_v10, %v440_v11  ;;  %v977_v13 = vpop.f32.mrb[1].mxu0 }
 0x193   : > { %v445_v14 = vmul.f32 0.01, %v441_v12  ;;  %vm444_vm1 = vcmp.gt.f32.partialorder %v441_v12, 0.0 }
 0x195   : > { %v446_v15 = vsel %vm444_vm1, %v441_v12, %v445_v14 }
 0x196   : > { %1011 = vmatmul.mubr.f32.vlgmr.msra.gmra.mrb[0].mxu1 %v446_v15 }
 0x197   : > { %1080 = vmatprep.mubr.msk.f32.mxu1 %vm1497_vm0, %v1498_v1  ;;  %1157 = vmatpush3.bf16.msra.mxu1 %v1156_v22  ;;  %v641_v1 = vld [vmem:[#allocation10 + $0x30] sm:$0xff] }
 0x198   : > { %1158 = vmatprep.subr.bf16.mxu1 %v1496_v0  ;;  %v1165_v29 = vpack.c.bf16 %v642_v28, %v641_v1 }
 0x19b   : > { %1160 = vmatpush3.bf16.msra.mxu1 %v1159_v24 }
 0x19c   : > { %1161 = vmatprep.subr.bf16.mxu1 %v1496_v0 }
 0x19f   : > { %1163 = vmatpush3.bf16.msra.mxu1 %v1162_v27 }
 0x1a0   : > { %1164 = vmatprep.subr.bf16.mxu1 %v1496_v0 }
 0x1a3   : > { %1166 = vmatpush3.bf16.msra.mxu1 %v1165_v29 }
 0x1a4   : > { %1167 = vmatprep.subr.bf16.mxu1 %v1496_v0 }
 0x1a7   : > { %1169 = vmatpush3.bf16.msra.mxu1 %v1168_v32 }
 0x1a8   : > { %1170 = vmatprep.subr.bf16.mxu1 %v1496_v0 }
 0x1ab   : > { %1172 = vmatpush3.bf16.msra.mxu1 %v1171_v35 }
 0x1ac   : > { %1173 = vmatprep.subr.bf16.mxu1 %v1496_v0 }
 0x1af   : > { %1175 = vmatpush3.bf16.msra.mxu1 %v1174_v38 }
 0x1b0   : > { %1176 = vmatprep.subr.bf16.mxu1 %v1496_v0  ;;  %v869_v0 = vld [vmem:[%s1895_s4 + $0x2] ss:$0 sm:$0xff] }
 0x1b3   : > { %1178 = vmatpush3.bf16.msra.mxu1 %v1177_v47 }
 0x269   : > { %v534_v40 = vpop.f32.mrb[0].mxu1 }
 0x26a   : > { %v535_v41 = vadd.f32 %v868_v39, %v534_v40  ;;  %v1012_v42 = vpop.f32.mrb[1].mxu1 }
 0x26c   : > { %vm538_vm2 = vcmp.gt.f32.partialorder %v535_v41, 0.0  ;;  %v539_v43 = vmul.f32 0.01, %v535_v41 }
 0x26e   : > { %v540_v44 = vsel %vm538_vm2, %v535_v41, %v539_v43 }
 0x26f   : > { %1046 = vmatmul.mubr.f32.vlgmr.msra.gmra.mrb[2].mxu0 %v540_v44 }
 0x342   : > { %v628_v48 = vpop.f32.mrb[2].mxu0 }
 0x343   : > { %v629_v49 = vadd.f32 %v869_v0, %v628_v48  ;;  %v1047_v50 = vpop.f32.mrb[3].mxu0 }
 0x345   : > { %vm632_vm3 = vcmp.gt.f32.partialorder %v629_v49, 0.0  ;;  %v633_v51 = vmul.f32 0.01, %v629_v49 }
 0x347   : > { %v634_v52 = vsel %vm632_vm3, %v629_v49, %v633_v51 }
 0x348   : > { %1081 = vmatmul.mubr.f32.vlgmr.msra.gmra.mrb[2].mxu1 %v634_v52 }
 0x41b   : > { %v724_v54 = vpop.f32.mrb[2].mxu1 }
 0x41c   : > { %v725_v55 = vadd.f32 %v870_v53, %v724_v54  ;;  %v1082_v56 = vpop.f32.mrb[3].mxu1 }
 0x41e   : > { %728 = vst [vmem:[%s351_s17] sm:$0xff] %v725_v55 }
 0x41f   : > { %1426 = shalt.err (!%p1423_p0)
}
 0x420   : > { %s1427_s22 = scalar_lea.hbm %s1847_s23, 128  ;;  %s1431_s10 = scalar_lea.hbm %s1898_s7, 256 }
 0x421   : > { %p1428_p2 = scmp.ne.s32.totalorder %s1847_s23, %s1427_s22  ;;  %p1432_p10 = scmp.lt.u32.totalorder %s1847_s23, %s1898_s7 }
 0x422   : > { %p1433_p11 = scmp.lt.u32.totalorder %s1431_s10, %s1427_s22  ;;  %p1435_p6 = scmp.lt.u32.totalorder %s1427_s22, %s1847_s23 }
 0x423   : > { %p1429_p8 = pnand %p1428_p2, %p1916_p5 }
 0x424   : > { %p1434_p1 = por %p1433_p11, %p1432_p10 }
 0x425   : > { %p1430_p4 = pneg %p1429_p8 }
 0x426   : > { %p1436_p7 = por %p1435_p6, %p1434_p1 }
 0x428   : > { %p1437_p9 = pnand %p1436_p7, %p1430_p4 }
 0x42a   : > { %1440 = shalt.err (!%p1437_p9)
}
 0x42b   : > { %1197 = dma.vmem_to_hbm [thread:$0]  (%p1916_p5), %s1849_s14, 128, %s1847_s23, %s730_s13  }
 0x42c PF: > { %s755_s20 = sand.u32 1, %s1475_s24   ;;  %p1917_p12 = scmp.ne.s32.totalorder %s1909_s15, 0 }
 0x42d   : > { %p1918_p3 = scmp.ge.s32.totalorder %s1487_s27, 2  ;;  %s756_s8 = scalar_lea.sflag [#allocation4], %s755_s20 }
 0x42f   : > { %p1217_p13 = pnand %p1918_p3, %p1917_p12 }
 0x431   : > { %1470 = dma.done.wait (!%p1217_p13), %s756_s8, 128  }
 0x432   : > { %1472 = vsyncadd (!%p1217_p13), %s756_s8, 4294967168  ;;  %p22_p0 = scmp.ge.s32.totalorder %s1692_s19, 4   ;;  %s1919_s24 = smov %s1479_s25 }
 0x433   : > { %s1920_s25 = smov %s1483_s26  ;;  %s1921_s26 = smov %s1703_s12 }
 0x434   : > { %s1922_s27 = smov %s1692_s19  ;;  %24 = sbr.rel (!%p22_p0) target bundleno = 7 (0x7), region = 109 }
 0x43b   :  { %761 = vsyncpa [#allocation3], 1 }
 0x43c   :  { %763 = vsyncpa [#allocation3 + $0x1], 1 }
 0x43d   :  { %764 = vsyncpa [#allocation6], 1 }
 0x43e   :  { %765 = vsyncpa [#allocation9], 1 }
 0x43f   :  { %766 = vsyncpa [#allocation4], 1 }
 0x440   :  { %768 = vsyncpa [#allocation4 + $0x1], 1 }

</bundles_post_ra>
